<compile_context>
chip_gen: v6e
topology: v6e:2x2x1
jax: 0.10.0
libtpu: 0.0.40
codegen_flags: <defaults>
</compile_context>

<pallas_src>
import functools
import math

import jax
import jax.numpy as jnp
from jax.experimental import pallas as pl
from jax.experimental.pallas import tpu as pltpu

EPS = 1e-5  # PyTorch LayerNorm default eps


def _layer_norm(x, gamma, beta):
    mean = jnp.mean(x, axis=-1, keepdims=True)
    var = jnp.mean((x - mean) ** 2, axis=-1, keepdims=True)  # biased, like torch
    return (x - mean) * jax.lax.rsqrt(var + EPS) * gamma + beta


def _bf16(x):
    return x.astype(jnp.bfloat16)


def encoder_stack_kernel(nlayers, nhead, batch, seq,
                         x_ref, wqkv_ref, wo_ref, w1_ref, w2_ref, vec_ref,
                         o_ref):
    """All encoder layers fused; single invocation (grid=()), batch folded into rows.

    x_ref    : (B*S, E)     activations, f32
    wqkv_ref : (L, E, 3E)   [Wq*1/sqrt(d) | Wk | Wv], bf16, head-major columns
    wo_ref   : (L, E, E)    out-projection, bf16
    w1_ref   : (L, E, F)    FFN linear1, bf16
    w2_ref   : (L, F, E)    FFN linear2, bf16
    vec_ref  : (L, 8, P)    f32 packed vectors, rows =
                            [bqkv(3E), bo, ln1_g, ln1_b, b1(F), b2, ln2_g, ln2_b]
    """
    B, S, H = batch, seq, nhead
    BS, E = x_ref.shape
    d = E // H
    F = w1_ref.shape[2]
    E3 = 3 * E

    x = x_ref[...]                                      # (BS, E) f32

    for l in range(nlayers):                            # static unroll (L=2)
        vec = vec_ref[l]                                # (8, P) f32

        # ---- fused QKV projection: one full-width matmul --------------------
        xb = _bf16(x)
        qkv = jnp.dot(xb, wqkv_ref[l],
                      preferred_element_type=jnp.float32) + vec[0, :E3]  # (BS, 3E)

        # split heads -> batched (H*B, S, d) tensors (lane slices are cheap;
        # all reshapes below touch non-lane dims only)
        def heads(base):
            hs = [qkv[:, base + h * d: base + (h + 1) * d] for h in range(H)]
            return jnp.stack(hs).reshape(H * B, S, d)   # (H, B*S, d) -> (H*B, S, d)

        qh = heads(0)          # 1/sqrt(d) already folded into Wq/bq
        kh = heads(E)
        vh = heads(2 * E)

        # ---- attention (softmax in f32, MXU operands bf16) -------------------
        s = jnp.einsum("nqd,nkd->nqk", _bf16(qh), _bf16(kh),
                       preferred_element_type=jnp.float32)        # (H*B, S, S)
        s = s - jnp.max(s, axis=-1, keepdims=True)
        p = jnp.exp(s)                                            # f32 EUP
        p = p * pl.reciprocal(jnp.sum(p, axis=-1, keepdims=True), approx=True)
        o3 = jnp.einsum("nqk,nkd->nqd", _bf16(p), _bf16(vh),
                        preferred_element_type=jnp.float32)       # (H*B, S, d)

        # merge heads back to a lane-dense (BS, E) slab, ONE out-proj matmul
        o3 = o3.reshape(H, BS, d)
        ctx = jnp.concatenate([o3[h] for h in range(H)], axis=-1)  # (BS, E)
        attn = jnp.dot(_bf16(ctx), wo_ref[l],
                       preferred_element_type=jnp.float32) + vec[1, :E]

        x = _layer_norm(x + attn, vec[2, :E], vec[3, :E])

        # ---- feed forward ----------------------------------------------------
        h1 = jnp.dot(_bf16(x), w1_ref[l],
                     preferred_element_type=jnp.float32) + vec[4, :F]
        h1 = jnp.maximum(h1, 0.0)                                  # relu
        ff = jnp.dot(_bf16(h1), w2_ref[l],
                     preferred_element_type=jnp.float32) + vec[5, :E]

        x = _layer_norm(x + ff, vec[6, :E], vec[7, :E])

    o_ref[...] = x


def pack_params(layer_params, nhead):
    """Pack per-layer params: lane-dense bf16 matmul weights + one f32 vector block.

    1/sqrt(d) is folded into Wq/bq in f32 BEFORE the bf16 cast.
    """
    E = layer_params[0]["wq"].shape[0]
    F = layer_params[0]["w1"].shape[1]
    d = E // nhead
    scale = 1.0 / math.sqrt(d)
    P = max(3 * E, F)

    def pad_row(v):
        v = v.reshape(-1).astype(jnp.float32)
        return jnp.pad(v, (0, P - v.shape[0]))

    wqkv, wo, w1, w2, vecs = [], [], [], [], []
    for p in layer_params:
        wq_scaled = (p["wq"] * scale).astype(jnp.float32)
        wqkv.append(jnp.concatenate([wq_scaled, p["wk"], p["wv"]],
                                    axis=1).astype(jnp.bfloat16))        # (E, 3E)
        wo.append(p["wo"].astype(jnp.bfloat16))                          # (E, E)
        w1.append(p["w1"].astype(jnp.bfloat16))                          # (E, F)
        w2.append(p["w2"].astype(jnp.bfloat16))                          # (F, E)
        bqkv = jnp.concatenate([p["bq"] * scale, p["bk"], p["bv"]])      # (3E,)
        vecs.append(jnp.stack([pad_row(bqkv), pad_row(p["bo"]),
                               pad_row(p["g1"]), pad_row(p["be1"]),
                               pad_row(p["b1"]), pad_row(p["b2"]),
                               pad_row(p["g2"]), pad_row(p["be2"])]))    # (8, P)

    return dict(wqkv=jnp.stack(wqkv), wo=jnp.stack(wo),
                w1=jnp.stack(w1), w2=jnp.stack(w2), vecs=jnp.stack(vecs))


def transformer_encoder(x, packed, nhead):
    B, S, E = x.shape
    L, _, F = packed["w1"].shape
    d = E // nhead
    x2d = x.reshape(B * S, E)                       # fold batch into rows

    weight_bytes = sum(int(packed[k].size) * packed[k].dtype.itemsize
                       for k in ("wqkv", "wo", "w1", "w2", "vecs"))
    flops = L * (2 * B * S * E * (3 * E + E + 2 * F)      # projections + FFN
                 + 4 * B * nhead * S * S * d)             # scores + AV
    cost = pl.CostEstimate(flops=flops,
                           transcendentals=L * B * nhead * S * S,
                           bytes_accessed=weight_bytes + 2 * B * S * E * 4)

    vmem_spec = pl.BlockSpec(memory_space=pltpu.MemorySpace.VMEM)
    out2d = pl.pallas_call(
        functools.partial(encoder_stack_kernel, L, nhead, B, S),
        out_shape=jax.ShapeDtypeStruct((B * S, E), jnp.float32),
        in_specs=[vmem_spec] * 6,
        out_specs=vmem_spec,
        cost_estimate=cost,
        compiler_params=pltpu.CompilerParams(
            vmem_limit_bytes=32 * 1024 * 1024),
    )(x2d, packed["wqkv"], packed["wo"], packed["w1"], packed["w2"],
      packed["vecs"])
    return out2d.reshape(B, S, E)


# ---------------- pure-JAX reference (mirrors PyTorch post-norm layer) -------
def reference_encoder(x, layer_params, nhead):
    B, S, E = x.shape
    d = E // nhead
    for p in layer_params:
        q = x @ p["wq"] + p["bq"]
        k = x @ p["wk"] + p["bk"]
        v = x @ p["wv"] + p["bv"]

        def split(t):
            return t.reshape(B, S, nhead, d).transpose(0, 2, 1, 3)

        qh, kh, vh = split(q), split(k), split(v)
        s = jnp.einsum("bhqd,bhkd->bhqk", qh, kh) / math.sqrt(d)
        a = jax.nn.softmax(s, axis=-1)
        o = jnp.einsum("bhqk,bhkd->bhqd", a, vh)
        o = o.transpose(0, 2, 1, 3).reshape(B, S, E)
        attn = o @ p["wo"] + p["bo"]
        x = _layer_norm(x + attn, p["g1"], p["be1"])
        h1 = jax.nn.relu(x @ p["w1"] + p["b1"])
        ff = h1 @ p["w2"] + p["b2"]
        x = _layer_norm(x + ff, p["g2"], p["be2"])
    return x


def init_layer_params(key, embed_size, nhid):
    ks = jax.random.split(key, 16)
    std = 0.02
    E = embed_size
    # weights stored already transposed so the math is y = x @ W + b
    return dict(
        wq=jax.random.normal(ks[0], (E, E), jnp.float32) * std,
        wk=jax.random.normal(ks[1], (E, E), jnp.float32) * std,
        wv=jax.random.normal(ks[2], (E, E), jnp.float32) * std,
        bq=jax.random.normal(ks[3], (E,), jnp.float32) * std,
        bk=jax.random.normal(ks[4], (E,), jnp.float32) * std,
        bv=jax.random.normal(ks[5], (E,), jnp.float32) * std,
        wo=jax.random.normal(ks[6], (E, E), jnp.float32) * std,
        bo=jax.random.normal(ks[7], (E,), jnp.float32) * std,
        g1=1.0 + jax.random.normal(ks[8], (E,), jnp.float32) * std,
        be1=jax.random.normal(ks[9], (E,), jnp.float32) * std,
        w1=jax.random.normal(ks[10], (E, nhid), jnp.float32) * std,
        b1=jax.random.normal(ks[11], (nhid,), jnp.float32) * std,
        w2=jax.random.normal(ks[12], (nhid, E), jnp.float32) * std,
        b2=jax.random.normal(ks[13], (E,), jnp.float32) * std,
        g2=1.0 + jax.random.normal(ks[14], (E,), jnp.float32) * std,
        be2=jax.random.normal(ks[15], (E,), jnp.float32) * std,
    )


if __name__ == "__main__":
    # TransformerModel(embed_size=32, nhead=4, nhid=64, nlayers=2)
    embed_size, nhead, nhid, nlayers = 32, 4, 64, 2
    B, S = 2, 8

    root = jax.random.PRNGKey(0)
    keys = jax.random.split(root, nlayers + 1)
    layer_params = [init_layer_params(keys[i], embed_size, nhid)
                    for i in range(nlayers)]
    packed = pack_params(layer_params, nhead)

    src = jax.random.normal(keys[-1], (B, S, embed_size), jnp.float32)

    out = transformer_encoder(src, packed, nhead)
    out = jax.block_until_ready(out)
    assert out.shape == (B, S, embed_size)
    assert bool(jnp.all(jnp.isfinite(out)))

    # loose tolerance: kernel uses bf16 MXU weights + approx reciprocal softmax
    ref = reference_encoder(src, layer_params, nhead)
    max_err = float(jnp.max(jnp.abs(out - ref)))
    assert max_err < 5e-2, f"kernel/reference mismatch: max_err={max_err}"
    print("KERNEL_OK")
</pallas_src>

<mosaic_0001>
module attributes {stable_mosaic.version = 11 : i64} {
  func.func @encoder_stack_kernel(%arg0: memref<16x32xf32, #tpu.memory_space<vmem>>, %arg1: memref<2x32x96xbf16, #tpu.memory_space<vmem>>, %arg2: memref<2x32x32xbf16, #tpu.memory_space<vmem>>, %arg3: memref<2x32x64xbf16, #tpu.memory_space<vmem>>, %arg4: memref<2x64x32xbf16, #tpu.memory_space<vmem>>, %arg5: memref<2x8x96xf32, #tpu.memory_space<vmem>>, %arg6: memref<16x32xf32, #tpu.memory_space<vmem>>) attributes {dimension_semantics = [], scalar_prefetch = 0 : i64, scratch_operands = 0 : i64, tpu.core_type = #tpu.core_type<tc>} {
    %c0 = arith.constant 0 : index
    %c0_0 = arith.constant 0 : index
    %0 = vector.load %arg0[%c0, %c0_0] : memref<16x32xf32, #tpu.memory_space<vmem>>, vector<16x32xf32>
    %c0_1 = arith.constant 0 : index
    %c0_2 = arith.constant 0 : index
    %c0_3 = arith.constant 0 : index
    %1 = vector.load %arg5[%c0_1, %c0_2, %c0_3] : memref<2x8x96xf32, #tpu.memory_space<vmem>>, vector<1x8x96xf32>
    %2 = vector.shape_cast %1 : vector<1x8x96xf32> to vector<8x96xf32>
    %3 = arith.truncf %0 : vector<16x32xf32> to vector<16x32xbf16>
    %c0_4 = arith.constant 0 : index
    %c0_5 = arith.constant 0 : index
    %c0_6 = arith.constant 0 : index
    %4 = vector.load %arg1[%c0_4, %c0_5, %c0_6] : memref<2x32x96xbf16, #tpu.memory_space<vmem>>, vector<1x32x96xbf16>
    %5 = vector.shape_cast %4 : vector<1x32x96xbf16> to vector<32x96xbf16>
    %cst = arith.constant dense<0.000000e+00> : vector<16x96xf32>
    %6 = tpu.matmul %3, %5, %cst {dimension_numbers = #tpu.dot_dimension_numbers<[1], [0], [0], [1], [0, 0, 1, 1], [], []>} : vector<16x32xbf16>, vector<32x96xbf16>, vector<16x96xf32> -> vector<16x96xf32>
    %7 = vector.extract_strided_slice %2 {offsets = [0, 0], sizes = [1, 96], strides = [1, 1]} : vector<8x96xf32> to vector<1x96xf32>
    %8 = vector.shape_cast %7 : vector<1x96xf32> to vector<96xf32>
    %9 = vector.shape_cast %8 : vector<96xf32> to vector<1x96xf32>
    %10 = vector.broadcast %9 : vector<1x96xf32> to vector<16x96xf32>
    %11 = arith.addf %6, %10 : vector<16x96xf32>
    %12 = vector.extract_strided_slice %11 {offsets = [0, 0], sizes = [16, 8], strides = [1, 1]} : vector<16x96xf32> to vector<16x8xf32>
    %13 = vector.extract_strided_slice %11 {offsets = [0, 8], sizes = [16, 8], strides = [1, 1]} : vector<16x96xf32> to vector<16x8xf32>
    %14 = vector.extract_strided_slice %11 {offsets = [0, 16], sizes = [16, 8], strides = [1, 1]} : vector<16x96xf32> to vector<16x8xf32>
    %15 = vector.extract_strided_slice %11 {offsets = [0, 24], sizes = [16, 8], strides = [1, 1]} : vector<16x96xf32> to vector<16x8xf32>
    %16 = vector.shape_cast %12 : vector<16x8xf32> to vector<1x16x8xf32>
    %17 = vector.shape_cast %13 : vector<16x8xf32> to vector<1x16x8xf32>
    %18 = vector.shape_cast %14 : vector<16x8xf32> to vector<1x16x8xf32>
    %19 = vector.shape_cast %15 : vector<16x8xf32> to vector<1x16x8xf32>
    %20 = tpu.concatenate %16, %17, %18, %19 in 0 : vector<1x16x8xf32>, vector<1x16x8xf32>, vector<1x16x8xf32>, vector<1x16x8xf32> -> vector<4x16x8xf32>
    %21 = vector.shape_cast %20 : vector<4x16x8xf32> to vector<8x8x8xf32>
    %22 = vector.extract_strided_slice %11 {offsets = [0, 32], sizes = [16, 8], strides = [1, 1]} : vector<16x96xf32> to vector<16x8xf32>
    %23 = vector.extract_strided_slice %11 {offsets = [0, 40], sizes = [16, 8], strides = [1, 1]} : vector<16x96xf32> to vector<16x8xf32>
    %24 = vector.extract_strided_slice %11 {offsets = [0, 48], sizes = [16, 8], strides = [1, 1]} : vector<16x96xf32> to vector<16x8xf32>
    %25 = vector.extract_strided_slice %11 {offsets = [0, 56], sizes = [16, 8], strides = [1, 1]} : vector<16x96xf32> to vector<16x8xf32>
    %26 = vector.shape_cast %22 : vector<16x8xf32> to vector<1x16x8xf32>
    %27 = vector.shape_cast %23 : vector<16x8xf32> to vector<1x16x8xf32>
    %28 = vector.shape_cast %24 : vector<16x8xf32> to vector<1x16x8xf32>
    %29 = vector.shape_cast %25 : vector<16x8xf32> to vector<1x16x8xf32>
    %30 = tpu.concatenate %26, %27, %28, %29 in 0 : vector<1x16x8xf32>, vector<1x16x8xf32>, vector<1x16x8xf32>, vector<1x16x8xf32> -> vector<4x16x8xf32>
    %31 = vector.shape_cast %30 : vector<4x16x8xf32> to vector<8x8x8xf32>
    %32 = vector.extract_strided_slice %11 {offsets = [0, 64], sizes = [16, 8], strides = [1, 1]} : vector<16x96xf32> to vector<16x8xf32>
    %33 = vector.extract_strided_slice %11 {offsets = [0, 72], sizes = [16, 8], strides = [1, 1]} : vector<16x96xf32> to vector<16x8xf32>
    %34 = vector.extract_strided_slice %11 {offsets = [0, 80], sizes = [16, 8], strides = [1, 1]} : vector<16x96xf32> to vector<16x8xf32>
    %35 = vector.extract_strided_slice %11 {offsets = [0, 88], sizes = [16, 8], strides = [1, 1]} : vector<16x96xf32> to vector<16x8xf32>
    %36 = vector.shape_cast %32 : vector<16x8xf32> to vector<1x16x8xf32>
    %37 = vector.shape_cast %33 : vector<16x8xf32> to vector<1x16x8xf32>
    %38 = vector.shape_cast %34 : vector<16x8xf32> to vector<1x16x8xf32>
    %39 = vector.shape_cast %35 : vector<16x8xf32> to vector<1x16x8xf32>
    %40 = tpu.concatenate %36, %37, %38, %39 in 0 : vector<1x16x8xf32>, vector<1x16x8xf32>, vector<1x16x8xf32>, vector<1x16x8xf32> -> vector<4x16x8xf32>
    %41 = vector.shape_cast %40 : vector<4x16x8xf32> to vector<8x8x8xf32>
    %42 = arith.truncf %21 : vector<8x8x8xf32> to vector<8x8x8xbf16>
    %43 = arith.truncf %31 : vector<8x8x8xf32> to vector<8x8x8xbf16>
    "tpu.trace_start"() <{level = 10 : i32, message = "nqd,nkd->nqk"}> : () -> ()
    %cst_7 = arith.constant dense<0.000000e+00> : vector<8x8x8xf32>
    %44 = tpu.matmul %42, %43, %cst_7 {dimension_numbers = #tpu.dot_dimension_numbers<[2], [2], [1], [1], [0, 0, 0, 1, 1, 1], [0], [0]>} : vector<8x8x8xbf16>, vector<8x8x8xbf16>, vector<8x8x8xf32> -> vector<8x8x8xf32>
    "tpu.trace_stop"() : () -> ()
    %cst_8 = arith.constant dense<0xFF800000> : vector<8x8xf32>
    %45 = vector.multi_reduction <maximumf>, %44, %cst_8 [2] : vector<8x8x8xf32> to vector<8x8xf32>
    %46 = vector.shape_cast %45 : vector<8x8xf32> to vector<8x8x1xf32>
    %47 = vector.broadcast %46 : vector<8x8x1xf32> to vector<8x8x8xf32>
    %48 = arith.subf %44, %47 : vector<8x8x8xf32>
    %49 = math.exp %48 : vector<8x8x8xf32>
    %cst_9 = arith.constant dense<0.000000e+00> : vector<8x8xf32>
    %50 = vector.multi_reduction <add>, %49, %cst_9 [2] : vector<8x8x8xf32> to vector<8x8xf32>
    %51 = vector.shape_cast %50 : vector<8x8xf32> to vector<8x8x1xf32>
    %52 = tpu.reciprocal %51 {approx = true} : vector<8x8x1xf32> -> vector<8x8x1xf32>
    %53 = vector.broadcast %52 : vector<8x8x1xf32> to vector<8x8x8xf32>
    %54 = arith.mulf %49, %53 : vector<8x8x8xf32>
    %55 = arith.truncf %54 : vector<8x8x8xf32> to vector<8x8x8xbf16>
    %56 = arith.truncf %41 : vector<8x8x8xf32> to vector<8x8x8xbf16>
    "tpu.trace_start"() <{level = 10 : i32, message = "nqk,nkd->nqd"}> : () -> ()
    %cst_10 = arith.constant dense<0.000000e+00> : vector<8x8x8xf32>
    %57 = tpu.matmul %55, %56, %cst_10 {dimension_numbers = #tpu.dot_dimension_numbers<[2], [1], [1], [2], [0, 0, 0, 1, 1, 2], [0], [0]>} : vector<8x8x8xbf16>, vector<8x8x8xbf16>, vector<8x8x8xf32> -> vector<8x8x8xf32>
    "tpu.trace_stop"() : () -> ()
    %58 = vector.shape_cast %57 : vector<8x8x8xf32> to vector<4x16x8xf32>
    %59 = vector.extract_strided_slice %58 {offsets = [0, 0, 0], sizes = [1, 16, 8], strides = [1, 1, 1]} : vector<4x16x8xf32> to vector<1x16x8xf32>
    %60 = vector.shape_cast %59 : vector<1x16x8xf32> to vector<16x8xf32>
    %61 = vector.extract_strided_slice %58 {offsets = [1, 0, 0], sizes = [1, 16, 8], strides = [1, 1, 1]} : vector<4x16x8xf32> to vector<1x16x8xf32>
    %62 = vector.shape_cast %61 : vector<1x16x8xf32> to vector<16x8xf32>
    %63 = vector.extract_strided_slice %58 {offsets = [2, 0, 0], sizes = [1, 16, 8], strides = [1, 1, 1]} : vector<4x16x8xf32> to vector<1x16x8xf32>
    %64 = vector.shape_cast %63 : vector<1x16x8xf32> to vector<16x8xf32>
    %65 = vector.extract_strided_slice %58 {offsets = [3, 0, 0], sizes = [1, 16, 8], strides = [1, 1, 1]} : vector<4x16x8xf32> to vector<1x16x8xf32>
    %66 = vector.shape_cast %65 : vector<1x16x8xf32> to vector<16x8xf32>
    %67 = tpu.concatenate %60, %62, %64, %66 in 1 : vector<16x8xf32>, vector<16x8xf32>, vector<16x8xf32>, vector<16x8xf32> -> vector<16x32xf32>
    %68 = arith.truncf %67 : vector<16x32xf32> to vector<16x32xbf16>
    %c0_11 = arith.constant 0 : index
    %c0_12 = arith.constant 0 : index
    %c0_13 = arith.constant 0 : index
    %69 = vector.load %arg2[%c0_11, %c0_12, %c0_13] : memref<2x32x32xbf16, #tpu.memory_space<vmem>>, vector<1x32x32xbf16>
    %70 = vector.shape_cast %69 : vector<1x32x32xbf16> to vector<32x32xbf16>
    %cst_14 = arith.constant dense<0.000000e+00> : vector<16x32xf32>
    %71 = tpu.matmul %68, %70, %cst_14 {dimension_numbers = #tpu.dot_dimension_numbers<[1], [0], [0], [1], [0, 0, 1, 1], [], []>} : vector<16x32xbf16>, vector<32x32xbf16>, vector<16x32xf32> -> vector<16x32xf32>
    %72 = vector.extract_strided_slice %2 {offsets = [1, 0], sizes = [1, 32], strides = [1, 1]} : vector<8x96xf32> to vector<1x32xf32>
    %73 = vector.shape_cast %72 : vector<1x32xf32> to vector<32xf32>
    %74 = vector.shape_cast %73 : vector<32xf32> to vector<1x32xf32>
    %75 = vector.broadcast %74 : vector<1x32xf32> to vector<16x32xf32>
    %76 = arith.addf %71, %75 : vector<16x32xf32>
    %77 = arith.addf %0, %76 : vector<16x32xf32>
    %78 = vector.extract_strided_slice %2 {offsets = [2, 0], sizes = [1, 32], strides = [1, 1]} : vector<8x96xf32> to vector<1x32xf32>
    %79 = vector.shape_cast %78 : vector<1x32xf32> to vector<32xf32>
    %80 = vector.extract_strided_slice %2 {offsets = [3, 0], sizes = [1, 32], strides = [1, 1]} : vector<8x96xf32> to vector<1x32xf32>
    %81 = vector.shape_cast %80 : vector<1x32xf32> to vector<32xf32>
    %cst_15 = arith.constant dense<0.000000e+00> : vector<16xf32>
    %82 = vector.multi_reduction <add>, %77, %cst_15 [1] : vector<16x32xf32> to vector<16xf32>
    %83 = vector.shape_cast %82 : vector<16xf32> to vector<16x1xf32>
    %cst_16 = arith.constant 3.200000e+01 : f32
    %84 = vector.broadcast %cst_16 : f32 to vector<16x1xf32>
    %85 = arith.divf %83, %84 : vector<16x1xf32>
    %86 = vector.broadcast %85 : vector<16x1xf32> to vector<16x32xf32>
    %87 = arith.subf %77, %86 : vector<16x32xf32>
    %88 = arith.mulf %87, %87 : vector<16x32xf32>
    %cst_17 = arith.constant dense<0.000000e+00> : vector<16xf32>
    %89 = vector.multi_reduction <add>, %88, %cst_17 [1] : vector<16x32xf32> to vector<16xf32>
    %90 = vector.shape_cast %89 : vector<16xf32> to vector<16x1xf32>
    %cst_18 = arith.constant 3.200000e+01 : f32
    %91 = vector.broadcast %cst_18 : f32 to vector<16x1xf32>
    %92 = arith.divf %90, %91 : vector<16x1xf32>
    %93 = vector.broadcast %85 : vector<16x1xf32> to vector<16x32xf32>
    %94 = arith.subf %77, %93 : vector<16x32xf32>
    %cst_19 = arith.constant 9.99999974E-6 : f32
    %95 = vector.broadcast %cst_19 : f32 to vector<16x1xf32>
    %96 = arith.addf %92, %95 : vector<16x1xf32>
    %97 = math.rsqrt %96 : vector<16x1xf32>
    %98 = vector.broadcast %97 : vector<16x1xf32> to vector<16x32xf32>
    %99 = arith.mulf %94, %98 : vector<16x32xf32>
    %100 = vector.shape_cast %79 : vector<32xf32> to vector<1x32xf32>
    %101 = vector.broadcast %100 : vector<1x32xf32> to vector<16x32xf32>
    %102 = arith.mulf %99, %101 : vector<16x32xf32>
    %103 = vector.shape_cast %81 : vector<32xf32> to vector<1x32xf32>
    %104 = vector.broadcast %103 : vector<1x32xf32> to vector<16x32xf32>
    %105 = arith.addf %102, %104 : vector<16x32xf32>
    %106 = arith.truncf %105 : vector<16x32xf32> to vector<16x32xbf16>
    %c0_20 = arith.constant 0 : index
    %c0_21 = arith.constant 0 : index
    %c0_22 = arith.constant 0 : index
    %107 = vector.load %arg3[%c0_20, %c0_21, %c0_22] : memref<2x32x64xbf16, #tpu.memory_space<vmem>>, vector<1x32x64xbf16>
    %108 = vector.shape_cast %107 : vector<1x32x64xbf16> to vector<32x64xbf16>
    %cst_23 = arith.constant dense<0.000000e+00> : vector<16x64xf32>
    %109 = tpu.matmul %106, %108, %cst_23 {dimension_numbers = #tpu.dot_dimension_numbers<[1], [0], [0], [1], [0, 0, 1, 1], [], []>} : vector<16x32xbf16>, vector<32x64xbf16>, vector<16x64xf32> -> vector<16x64xf32>
    %110 = vector.extract_strided_slice %2 {offsets = [4, 0], sizes = [1, 64], strides = [1, 1]} : vector<8x96xf32> to vector<1x64xf32>
    %111 = vector.shape_cast %110 : vector<1x64xf32> to vector<64xf32>
    %112 = vector.shape_cast %111 : vector<64xf32> to vector<1x64xf32>
    %113 = vector.broadcast %112 : vector<1x64xf32> to vector<16x64xf32>
    %114 = arith.addf %109, %113 : vector<16x64xf32>
    %cst_24 = arith.constant 0.000000e+00 : f32
    %115 = vector.broadcast %cst_24 : f32 to vector<16x64xf32>
    %116 = arith.maximumf %114, %115 : vector<16x64xf32>
    %117 = arith.truncf %116 : vector<16x64xf32> to vector<16x64xbf16>
    %c0_25 = arith.constant 0 : index
    %c0_26 = arith.constant 0 : index
    %c0_27 = arith.constant 0 : index
    %118 = vector.load %arg4[%c0_25, %c0_26, %c0_27] : memref<2x64x32xbf16, #tpu.memory_space<vmem>>, vector<1x64x32xbf16>
    %119 = vector.shape_cast %118 : vector<1x64x32xbf16> to vector<64x32xbf16>
    %cst_28 = arith.constant dense<0.000000e+00> : vector<16x32xf32>
    %120 = tpu.matmul %117, %119, %cst_28 {dimension_numbers = #tpu.dot_dimension_numbers<[1], [0], [0], [1], [0, 0, 1, 1], [], []>} : vector<16x64xbf16>, vector<64x32xbf16>, vector<16x32xf32> -> vector<16x32xf32>
    %121 = vector.extract_strided_slice %2 {offsets = [5, 0], sizes = [1, 32], strides = [1, 1]} : vector<8x96xf32> to vector<1x32xf32>
    %122 = vector.shape_cast %121 : vector<1x32xf32> to vector<32xf32>
    %123 = vector.shape_cast %122 : vector<32xf32> to vector<1x32xf32>
    %124 = vector.broadcast %123 : vector<1x32xf32> to vector<16x32xf32>
    %125 = arith.addf %120, %124 : vector<16x32xf32>
    %126 = arith.addf %105, %125 : vector<16x32xf32>
    %127 = vector.extract_strided_slice %2 {offsets = [6, 0], sizes = [1, 32], strides = [1, 1]} : vector<8x96xf32> to vector<1x32xf32>
    %128 = vector.shape_cast %127 : vector<1x32xf32> to vector<32xf32>
    %129 = vector.extract_strided_slice %2 {offsets = [7, 0], sizes = [1, 32], strides = [1, 1]} : vector<8x96xf32> to vector<1x32xf32>
    %130 = vector.shape_cast %129 : vector<1x32xf32> to vector<32xf32>
    %cst_29 = arith.constant dense<0.000000e+00> : vector<16xf32>
    %131 = vector.multi_reduction <add>, %126, %cst_29 [1] : vector<16x32xf32> to vector<16xf32>
    %132 = vector.shape_cast %131 : vector<16xf32> to vector<16x1xf32>
    %cst_30 = arith.constant 3.200000e+01 : f32
    %133 = vector.broadcast %cst_30 : f32 to vector<16x1xf32>
    %134 = arith.divf %132, %133 : vector<16x1xf32>
    %135 = vector.broadcast %134 : vector<16x1xf32> to vector<16x32xf32>
    %136 = arith.subf %126, %135 : vector<16x32xf32>
    %137 = arith.mulf %136, %136 : vector<16x32xf32>
    %cst_31 = arith.constant dense<0.000000e+00> : vector<16xf32>
    %138 = vector.multi_reduction <add>, %137, %cst_31 [1] : vector<16x32xf32> to vector<16xf32>
    %139 = vector.shape_cast %138 : vector<16xf32> to vector<16x1xf32>
    %cst_32 = arith.constant 3.200000e+01 : f32
    %140 = vector.broadcast %cst_32 : f32 to vector<16x1xf32>
    %141 = arith.divf %139, %140 : vector<16x1xf32>
    %142 = vector.broadcast %134 : vector<16x1xf32> to vector<16x32xf32>
    %143 = arith.subf %126, %142 : vector<16x32xf32>
    %cst_33 = arith.constant 9.99999974E-6 : f32
    %144 = vector.broadcast %cst_33 : f32 to vector<16x1xf32>
    %145 = arith.addf %141, %144 : vector<16x1xf32>
    %146 = math.rsqrt %145 : vector<16x1xf32>
    %147 = vector.broadcast %146 : vector<16x1xf32> to vector<16x32xf32>
    %148 = arith.mulf %143, %147 : vector<16x32xf32>
    %149 = vector.shape_cast %128 : vector<32xf32> to vector<1x32xf32>
    %150 = vector.broadcast %149 : vector<1x32xf32> to vector<16x32xf32>
    %151 = arith.mulf %148, %150 : vector<16x32xf32>
    %152 = vector.shape_cast %130 : vector<32xf32> to vector<1x32xf32>
    %153 = vector.broadcast %152 : vector<1x32xf32> to vector<16x32xf32>
    %154 = arith.addf %151, %153 : vector<16x32xf32>
    %c1 = arith.constant 1 : index
    %c0_34 = arith.constant 0 : index
    %c0_35 = arith.constant 0 : index
    %155 = vector.load %arg5[%c1, %c0_34, %c0_35] : memref<2x8x96xf32, #tpu.memory_space<vmem>>, vector<1x8x96xf32>
    %156 = vector.shape_cast %155 : vector<1x8x96xf32> to vector<8x96xf32>
    %157 = arith.truncf %154 : vector<16x32xf32> to vector<16x32xbf16>
    %c1_36 = arith.constant 1 : index
    %c0_37 = arith.constant 0 : index
    %c0_38 = arith.constant 0 : index
    %158 = vector.load %arg1[%c1_36, %c0_37, %c0_38] : memref<2x32x96xbf16, #tpu.memory_space<vmem>>, vector<1x32x96xbf16>
    %159 = vector.shape_cast %158 : vector<1x32x96xbf16> to vector<32x96xbf16>
    %cst_39 = arith.constant dense<0.000000e+00> : vector<16x96xf32>
    %160 = tpu.matmul %157, %159, %cst_39 {dimension_numbers = #tpu.dot_dimension_numbers<[1], [0], [0], [1], [0, 0, 1, 1], [], []>} : vector<16x32xbf16>, vector<32x96xbf16>, vector<16x96xf32> -> vector<16x96xf32>
    %161 = vector.extract_strided_slice %156 {offsets = [0, 0], sizes = [1, 96], strides = [1, 1]} : vector<8x96xf32> to vector<1x96xf32>
    %162 = vector.shape_cast %161 : vector<1x96xf32> to vector<96xf32>
    %163 = vector.shape_cast %162 : vector<96xf32> to vector<1x96xf32>
    %164 = vector.broadcast %163 : vector<1x96xf32> to vector<16x96xf32>
    %165 = arith.addf %160, %164 : vector<16x96xf32>
    %166 = vector.extract_strided_slice %165 {offsets = [0, 0], sizes = [16, 8], strides = [1, 1]} : vector<16x96xf32> to vector<16x8xf32>
    %167 = vector.extract_strided_slice %165 {offsets = [0, 8], sizes = [16, 8], strides = [1, 1]} : vector<16x96xf32> to vector<16x8xf32>
    %168 = vector.extract_strided_slice %165 {offsets = [0, 16], sizes = [16, 8], strides = [1, 1]} : vector<16x96xf32> to vector<16x8xf32>
    %169 = vector.extract_strided_slice %165 {offsets = [0, 24], sizes = [16, 8], strides = [1, 1]} : vector<16x96xf32> to vector<16x8xf32>
    %170 = vector.shape_cast %166 : vector<16x8xf32> to vector<1x16x8xf32>
    %171 = vector.shape_cast %167 : vector<16x8xf32> to vector<1x16x8xf32>
    %172 = vector.shape_cast %168 : vector<16x8xf32> to vector<1x16x8xf32>
    %173 = vector.shape_cast %169 : vector<16x8xf32> to vector<1x16x8xf32>
    %174 = tpu.concatenate %170, %171, %172, %173 in 0 : vector<1x16x8xf32>, vector<1x16x8xf32>, vector<1x16x8xf32>, vector<1x16x8xf32> -> vector<4x16x8xf32>
    %175 = vector.shape_cast %174 : vector<4x16x8xf32> to vector<8x8x8xf32>
    %176 = vector.extract_strided_slice %165 {offsets = [0, 32], sizes = [16, 8], strides = [1, 1]} : vector<16x96xf32> to vector<16x8xf32>
    %177 = vector.extract_strided_slice %165 {offsets = [0, 40], sizes = [16, 8], strides = [1, 1]} : vector<16x96xf32> to vector<16x8xf32>
    %178 = vector.extract_strided_slice %165 {offsets = [0, 48], sizes = [16, 8], strides = [1, 1]} : vector<16x96xf32> to vector<16x8xf32>
    %179 = vector.extract_strided_slice %165 {offsets = [0, 56], sizes = [16, 8], strides = [1, 1]} : vector<16x96xf32> to vector<16x8xf32>
    %180 = vector.shape_cast %176 : vector<16x8xf32> to vector<1x16x8xf32>
    %181 = vector.shape_cast %177 : vector<16x8xf32> to vector<1x16x8xf32>
    %182 = vector.shape_cast %178 : vector<16x8xf32> to vector<1x16x8xf32>
    %183 = vector.shape_cast %179 : vector<16x8xf32> to vector<1x16x8xf32>
    %184 = tpu.concatenate %180, %181, %182, %183 in 0 : vector<1x16x8xf32>, vector<1x16x8xf32>, vector<1x16x8xf32>, vector<1x16x8xf32> -> vector<4x16x8xf32>
    %185 = vector.shape_cast %184 : vector<4x16x8xf32> to vector<8x8x8xf32>
    %186 = vector.extract_strided_slice %165 {offsets = [0, 64], sizes = [16, 8], strides = [1, 1]} : vector<16x96xf32> to vector<16x8xf32>
    %187 = vector.extract_strided_slice %165 {offsets = [0, 72], sizes = [16, 8], strides = [1, 1]} : vector<16x96xf32> to vector<16x8xf32>
    %188 = vector.extract_strided_slice %165 {offsets = [0, 80], sizes = [16, 8], strides = [1, 1]} : vector<16x96xf32> to vector<16x8xf32>
    %189 = vector.extract_strided_slice %165 {offsets = [0, 88], sizes = [16, 8], strides = [1, 1]} : vector<16x96xf32> to vector<16x8xf32>
    %190 = vector.shape_cast %186 : vector<16x8xf32> to vector<1x16x8xf32>
    %191 = vector.shape_cast %187 : vector<16x8xf32> to vector<1x16x8xf32>
    %192 = vector.shape_cast %188 : vector<16x8xf32> to vector<1x16x8xf32>
    %193 = vector.shape_cast %189 : vector<16x8xf32> to vector<1x16x8xf32>
    %194 = tpu.concatenate %190, %191, %192, %193 in 0 : vector<1x16x8xf32>, vector<1x16x8xf32>, vector<1x16x8xf32>, vector<1x16x8xf32> -> vector<4x16x8xf32>
    %195 = vector.shape_cast %194 : vector<4x16x8xf32> to vector<8x8x8xf32>
    %196 = arith.truncf %175 : vector<8x8x8xf32> to vector<8x8x8xbf16>
    %197 = arith.truncf %185 : vector<8x8x8xf32> to vector<8x8x8xbf16>
    "tpu.trace_start"() <{level = 10 : i32, message = "nqd,nkd->nqk"}> : () -> ()
    %cst_40 = arith.constant dense<0.000000e+00> : vector<8x8x8xf32>
    %198 = tpu.matmul %196, %197, %cst_40 {dimension_numbers = #tpu.dot_dimension_numbers<[2], [2], [1], [1], [0, 0, 0, 1, 1, 1], [0], [0]>} : vector<8x8x8xbf16>, vector<8x8x8xbf16>, vector<8x8x8xf32> -> vector<8x8x8xf32>
    "tpu.trace_stop"() : () -> ()
    %cst_41 = arith.constant dense<0xFF800000> : vector<8x8xf32>
    %199 = vector.multi_reduction <maximumf>, %198, %cst_41 [2] : vector<8x8x8xf32> to vector<8x8xf32>
    %200 = vector.shape_cast %199 : vector<8x8xf32> to vector<8x8x1xf32>
    %201 = vector.broadcast %200 : vector<8x8x1xf32> to vector<8x8x8xf32>
    %202 = arith.subf %198, %201 : vector<8x8x8xf32>
    %203 = math.exp %202 : vector<8x8x8xf32>
    %cst_42 = arith.constant dense<0.000000e+00> : vector<8x8xf32>
    %204 = vector.multi_reduction <add>, %203, %cst_42 [2] : vector<8x8x8xf32> to vector<8x8xf32>
    %205 = vector.shape_cast %204 : vector<8x8xf32> to vector<8x8x1xf32>
    %206 = tpu.reciprocal %205 {approx = true} : vector<8x8x1xf32> -> vector<8x8x1xf32>
    %207 = vector.broadcast %206 : vector<8x8x1xf32> to vector<8x8x8xf32>
    %208 = arith.mulf %203, %207 : vector<8x8x8xf32>
    %209 = arith.truncf %208 : vector<8x8x8xf32> to vector<8x8x8xbf16>
    %210 = arith.truncf %195 : vector<8x8x8xf32> to vector<8x8x8xbf16>
    "tpu.trace_start"() <{level = 10 : i32, message = "nqk,nkd->nqd"}> : () -> ()
    %cst_43 = arith.constant dense<0.000000e+00> : vector<8x8x8xf32>
    %211 = tpu.matmul %209, %210, %cst_43 {dimension_numbers = #tpu.dot_dimension_numbers<[2], [1], [1], [2], [0, 0, 0, 1, 1, 2], [0], [0]>} : vector<8x8x8xbf16>, vector<8x8x8xbf16>, vector<8x8x8xf32> -> vector<8x8x8xf32>
    "tpu.trace_stop"() : () -> ()
    %212 = vector.shape_cast %211 : vector<8x8x8xf32> to vector<4x16x8xf32>
    %213 = vector.extract_strided_slice %212 {offsets = [0, 0, 0], sizes = [1, 16, 8], strides = [1, 1, 1]} : vector<4x16x8xf32> to vector<1x16x8xf32>
    %214 = vector.shape_cast %213 : vector<1x16x8xf32> to vector<16x8xf32>
    %215 = vector.extract_strided_slice %212 {offsets = [1, 0, 0], sizes = [1, 16, 8], strides = [1, 1, 1]} : vector<4x16x8xf32> to vector<1x16x8xf32>
    %216 = vector.shape_cast %215 : vector<1x16x8xf32> to vector<16x8xf32>
    %217 = vector.extract_strided_slice %212 {offsets = [2, 0, 0], sizes = [1, 16, 8], strides = [1, 1, 1]} : vector<4x16x8xf32> to vector<1x16x8xf32>
    %218 = vector.shape_cast %217 : vector<1x16x8xf32> to vector<16x8xf32>
    %219 = vector.extract_strided_slice %212 {offsets = [3, 0, 0], sizes = [1, 16, 8], strides = [1, 1, 1]} : vector<4x16x8xf32> to vector<1x16x8xf32>
    %220 = vector.shape_cast %219 : vector<1x16x8xf32> to vector<16x8xf32>
    %221 = tpu.concatenate %214, %216, %218, %220 in 1 : vector<16x8xf32>, vector<16x8xf32>, vector<16x8xf32>, vector<16x8xf32> -> vector<16x32xf32>
    %222 = arith.truncf %221 : vector<16x32xf32> to vector<16x32xbf16>
    %c1_44 = arith.constant 1 : index
    %c0_45 = arith.constant 0 : index
    %c0_46 = arith.constant 0 : index
    %223 = vector.load %arg2[%c1_44, %c0_45, %c0_46] : memref<2x32x32xbf16, #tpu.memory_space<vmem>>, vector<1x32x32xbf16>
    %224 = vector.shape_cast %223 : vector<1x32x32xbf16> to vector<32x32xbf16>
    %cst_47 = arith.constant dense<0.000000e+00> : vector<16x32xf32>
    %225 = tpu.matmul %222, %224, %cst_47 {dimension_numbers = #tpu.dot_dimension_numbers<[1], [0], [0], [1], [0, 0, 1, 1], [], []>} : vector<16x32xbf16>, vector<32x32xbf16>, vector<16x32xf32> -> vector<16x32xf32>
    %226 = vector.extract_strided_slice %156 {offsets = [1, 0], sizes = [1, 32], strides = [1, 1]} : vector<8x96xf32> to vector<1x32xf32>
    %227 = vector.shape_cast %226 : vector<1x32xf32> to vector<32xf32>
    %228 = vector.shape_cast %227 : vector<32xf32> to vector<1x32xf32>
    %229 = vector.broadcast %228 : vector<1x32xf32> to vector<16x32xf32>
    %230 = arith.addf %225, %229 : vector<16x32xf32>
    %231 = arith.addf %154, %230 : vector<16x32xf32>
    %232 = vector.extract_strided_slice %156 {offsets = [2, 0], sizes = [1, 32], strides = [1, 1]} : vector<8x96xf32> to vector<1x32xf32>
    %233 = vector.shape_cast %232 : vector<1x32xf32> to vector<32xf32>
    %234 = vector.extract_strided_slice %156 {offsets = [3, 0], sizes = [1, 32], strides = [1, 1]} : vector<8x96xf32> to vector<1x32xf32>
    %235 = vector.shape_cast %234 : vector<1x32xf32> to vector<32xf32>
    %cst_48 = arith.constant dense<0.000000e+00> : vector<16xf32>
    %236 = vector.multi_reduction <add>, %231, %cst_48 [1] : vector<16x32xf32> to vector<16xf32>
    %237 = vector.shape_cast %236 : vector<16xf32> to vector<16x1xf32>
    %cst_49 = arith.constant 3.200000e+01 : f32
    %238 = vector.broadcast %cst_49 : f32 to vector<16x1xf32>
    %239 = arith.divf %237, %238 : vector<16x1xf32>
    %240 = vector.broadcast %239 : vector<16x1xf32> to vector<16x32xf32>
    %241 = arith.subf %231, %240 : vector<16x32xf32>
    %242 = arith.mulf %241, %241 : vector<16x32xf32>
    %cst_50 = arith.constant dense<0.000000e+00> : vector<16xf32>
    %243 = vector.multi_reduction <add>, %242, %cst_50 [1] : vector<16x32xf32> to vector<16xf32>
    %244 = vector.shape_cast %243 : vector<16xf32> to vector<16x1xf32>
    %cst_51 = arith.constant 3.200000e+01 : f32
    %245 = vector.broadcast %cst_51 : f32 to vector<16x1xf32>
    %246 = arith.divf %244, %245 : vector<16x1xf32>
    %247 = vector.broadcast %239 : vector<16x1xf32> to vector<16x32xf32>
    %248 = arith.subf %231, %247 : vector<16x32xf32>
    %cst_52 = arith.constant 9.99999974E-6 : f32
    %249 = vector.broadcast %cst_52 : f32 to vector<16x1xf32>
    %250 = arith.addf %246, %249 : vector<16x1xf32>
    %251 = math.rsqrt %250 : vector<16x1xf32>
    %252 = vector.broadcast %251 : vector<16x1xf32> to vector<16x32xf32>
    %253 = arith.mulf %248, %252 : vector<16x32xf32>
    %254 = vector.shape_cast %233 : vector<32xf32> to vector<1x32xf32>
    %255 = vector.broadcast %254 : vector<1x32xf32> to vector<16x32xf32>
    %256 = arith.mulf %253, %255 : vector<16x32xf32>
    %257 = vector.shape_cast %235 : vector<32xf32> to vector<1x32xf32>
    %258 = vector.broadcast %257 : vector<1x32xf32> to vector<16x32xf32>
    %259 = arith.addf %256, %258 : vector<16x32xf32>
    %260 = arith.truncf %259 : vector<16x32xf32> to vector<16x32xbf16>
    %c1_53 = arith.constant 1 : index
    %c0_54 = arith.constant 0 : index
    %c0_55 = arith.constant 0 : index
    %261 = vector.load %arg3[%c1_53, %c0_54, %c0_55] : memref<2x32x64xbf16, #tpu.memory_space<vmem>>, vector<1x32x64xbf16>
    %262 = vector.shape_cast %261 : vector<1x32x64xbf16> to vector<32x64xbf16>
    %cst_56 = arith.constant dense<0.000000e+00> : vector<16x64xf32>
    %263 = tpu.matmul %260, %262, %cst_56 {dimension_numbers = #tpu.dot_dimension_numbers<[1], [0], [0], [1], [0, 0, 1, 1], [], []>} : vector<16x32xbf16>, vector<32x64xbf16>, vector<16x64xf32> -> vector<16x64xf32>
    %264 = vector.extract_strided_slice %156 {offsets = [4, 0], sizes = [1, 64], strides = [1, 1]} : vector<8x96xf32> to vector<1x64xf32>
    %265 = vector.shape_cast %264 : vector<1x64xf32> to vector<64xf32>
    %266 = vector.shape_cast %265 : vector<64xf32> to vector<1x64xf32>
    %267 = vector.broadcast %266 : vector<1x64xf32> to vector<16x64xf32>
    %268 = arith.addf %263, %267 : vector<16x64xf32>
    %cst_57 = arith.constant 0.000000e+00 : f32
    %269 = vector.broadcast %cst_57 : f32 to vector<16x64xf32>
    %270 = arith.maximumf %268, %269 : vector<16x64xf32>
    %271 = arith.truncf %270 : vector<16x64xf32> to vector<16x64xbf16>
    %c1_58 = arith.constant 1 : index
    %c0_59 = arith.constant 0 : index
    %c0_60 = arith.constant 0 : index
    %272 = vector.load %arg4[%c1_58, %c0_59, %c0_60] : memref<2x64x32xbf16, #tpu.memory_space<vmem>>, vector<1x64x32xbf16>
    %273 = vector.shape_cast %272 : vector<1x64x32xbf16> to vector<64x32xbf16>
    %cst_61 = arith.constant dense<0.000000e+00> : vector<16x32xf32>
    %274 = tpu.matmul %271, %273, %cst_61 {dimension_numbers = #tpu.dot_dimension_numbers<[1], [0], [0], [1], [0, 0, 1, 1], [], []>} : vector<16x64xbf16>, vector<64x32xbf16>, vector<16x32xf32> -> vector<16x32xf32>
    %275 = vector.extract_strided_slice %156 {offsets = [5, 0], sizes = [1, 32], strides = [1, 1]} : vector<8x96xf32> to vector<1x32xf32>
    %276 = vector.shape_cast %275 : vector<1x32xf32> to vector<32xf32>
    %277 = vector.shape_cast %276 : vector<32xf32> to vector<1x32xf32>
    %278 = vector.broadcast %277 : vector<1x32xf32> to vector<16x32xf32>
    %279 = arith.addf %274, %278 : vector<16x32xf32>
    %280 = arith.addf %259, %279 : vector<16x32xf32>
    %281 = vector.extract_strided_slice %156 {offsets = [6, 0], sizes = [1, 32], strides = [1, 1]} : vector<8x96xf32> to vector<1x32xf32>
    %282 = vector.shape_cast %281 : vector<1x32xf32> to vector<32xf32>
    %283 = vector.extract_strided_slice %156 {offsets = [7, 0], sizes = [1, 32], strides = [1, 1]} : vector<8x96xf32> to vector<1x32xf32>
    %284 = vector.shape_cast %283 : vector<1x32xf32> to vector<32xf32>
    %cst_62 = arith.constant dense<0.000000e+00> : vector<16xf32>
    %285 = vector.multi_reduction <add>, %280, %cst_62 [1] : vector<16x32xf32> to vector<16xf32>
    %286 = vector.shape_cast %285 : vector<16xf32> to vector<16x1xf32>
    %cst_63 = arith.constant 3.200000e+01 : f32
    %287 = vector.broadcast %cst_63 : f32 to vector<16x1xf32>
    %288 = arith.divf %286, %287 : vector<16x1xf32>
    %289 = vector.broadcast %288 : vector<16x1xf32> to vector<16x32xf32>
    %290 = arith.subf %280, %289 : vector<16x32xf32>
    %291 = arith.mulf %290, %290 : vector<16x32xf32>
    %cst_64 = arith.constant dense<0.000000e+00> : vector<16xf32>
    %292 = vector.multi_reduction <add>, %291, %cst_64 [1] : vector<16x32xf32> to vector<16xf32>
    %293 = vector.shape_cast %292 : vector<16xf32> to vector<16x1xf32>
    %cst_65 = arith.constant 3.200000e+01 : f32
    %294 = vector.broadcast %cst_65 : f32 to vector<16x1xf32>
    %295 = arith.divf %293, %294 : vector<16x1xf32>
    %296 = vector.broadcast %288 : vector<16x1xf32> to vector<16x32xf32>
    %297 = arith.subf %280, %296 : vector<16x32xf32>
    %cst_66 = arith.constant 9.99999974E-6 : f32
    %298 = vector.broadcast %cst_66 : f32 to vector<16x1xf32>
    %299 = arith.addf %295, %298 : vector<16x1xf32>
    %300 = math.rsqrt %299 : vector<16x1xf32>
    %301 = vector.broadcast %300 : vector<16x1xf32> to vector<16x32xf32>
    %302 = arith.mulf %297, %301 : vector<16x32xf32>
    %303 = vector.shape_cast %282 : vector<32xf32> to vector<1x32xf32>
    %304 = vector.broadcast %303 : vector<1x32xf32> to vector<16x32xf32>
    %305 = arith.mulf %302, %304 : vector<16x32xf32>
    %306 = vector.shape_cast %284 : vector<32xf32> to vector<1x32xf32>
    %307 = vector.broadcast %306 : vector<1x32xf32> to vector<16x32xf32>
    %308 = arith.addf %305, %307 : vector<16x32xf32>
    %c0_67 = arith.constant 0 : index
    %c0_68 = arith.constant 0 : index
    %309 = vector.load %arg6[%c0_67, %c0_68] : memref<16x32xf32, #tpu.memory_space<vmem>>, vector<16x32xf32>
    tpu.vector_store %arg6[%c0_67, %c0_68], %308 {strides = array<i32>} : memref<16x32xf32, #tpu.memory_space<vmem>>, vector<16x32xf32>,
    return
  }
}

</mosaic_0001>

<bundles_post_ra>
// kernel: tpu_custom_call.1
= control target key start
LH: loop header
LB: loop body
LE: loop exit
PB: predicated region body
PF: predicated region fallthrough
CT: control target
= control target key end

     0   :  { %11 = vsyncpa [#allocation3], 0  ;;  %s3968_s0 = inlined_call_operand.hbm [shape: f32[16,32], index: 0, kind: input, shape index: {}]   ;;  %s3969_s1 = inlined_call_operand.vmem [shape: bf16[2,32,96], index: 1, kind: input, shape index: {}]   ;;  %s3970_s2 = inlined_call_operand.vmem [shape: bf16[2,32,32], index: 2, kind: input, shape index: {}]   ;;  %s3971_s3 = inlined_call_operand.vmem [shape: bf16[2,32,64], index: 3, kind: input, shape index: {}]   ;;  %s3972_s4 = inlined_call_operand.vmem [shape: bf16[2,64,32], index: 4, kind: input, shape index: {}]   ;;  %s3973_s5 = inlined_call_operand.hbm [shape: f32[2,8,96], index: 5, kind: input, shape index: {}]   ;;  %s3974_s6 = inlined_call_operand.hbm [shape: f32[16,32], index: 6, kind: output, shape index: {}]  }
   0x1   :  { %12 = vsyncpa [#allocation6], 0 }
   0x2   :  { %13 = vsyncpa [#allocation4], 0  ;;  %s3341_s21 = smov [#allocation2]  }
   0x3   :  { %s19_s22 = sshll.u32 %s3341_s21, 4  ;;  %s20_s22 = int_to_ptr.vmem [resolvable:$true] %s19_s22 }
   0x4   :  { %s3283_s23 = scalar_lea.vmem %s20_s22, 256  ;;  %p3288_p1 = scmp.lt.s32.totalorder %s20_s22, %s20_s22 }
   0x5   :  { %p3284_p0 = scmp.ne.s32.totalorder %s20_s22, %s3283_s23  ;;  %p3289_p2 = scmp.lt.s32.totalorder %s3283_s23, %s3283_s23 }
   0x7   :  { %p3290_p3 = por %p3289_p2, %p3288_p1 }
   0x9   :  { %p3291_p4 = pnand %p3290_p3, %p3284_p0 }
   0xb   :  { %3294 = shalt.err (!%p3291_p4)
}
   0xc   :  { %s3342_s24 = smov 128   ;;  %s3343_s25 = smov 8  }
   0xd   :  { %25 = dma.hbm_to_vmem [thread:$0]  %s3968_s0, 256, %s20_s22, [#allocation3], %s3342_s24, %s3342_s24, %s3343_s25  }
   0xe   :  { %s3344_s28 = smov [#allocation5]  }
   0xf   :  { %s39_s29 = sshll.u32 %s3344_s28, 4  ;;  %s40_s29 = int_to_ptr.vmem [resolvable:$true] %s39_s29 }
  0x10   :  { %s3303_s30 = scalar_lea.vmem %s40_s29, 256  ;;  %p3308_p6 = scmp.lt.s32.totalorder %s40_s29, %s40_s29 }
  0x11   :  { %p3304_p5 = scmp.ne.s32.totalorder %s40_s29, %s3303_s30  ;;  %p3309_p7 = scmp.lt.s32.totalorder %s3303_s30, %s3303_s30 }
  0x13   :  { %p3310_p8 = por %p3309_p7, %p3308_p6 }
  0x15   :  { %p3311_p9 = pnand %p3310_p8, %p3304_p5 }
  0x17   :  { %3314 = shalt.err (!%p3311_p9)
}
  0x18   :  { %45 = dma.hbm_to_vmem [thread:$0]  %s3973_s5, 256, %s40_s29, [#allocation6], %s3342_s24, %s3342_s24, %s3343_s25  }
  0x19   :  { %3335 = dma.done.wait [#allocation3], 256  }
  0x1a   :  { %3336 = vsyncadd [#allocation3], 4294967040 }
  0x1b   :  { %3337 = dma.done.wait [#allocation6], 256  }
  0x1c   :  { %3338 = vsyncadd [#allocation6], 4294967040  ;;  %v3345_v0 = vmov 0.0   ;;  %vm3346_vm0 = vmmov 0   ;;  %v3175_v1 = vld [vmem:[%s3969_s1 + $0x8] sm:$0xff]   ;;  %v3176_v2 = vld [vmem:[%s3969_s1] sm:$0xff]   ;;  %v61_v6 = vlaneseq }
  0x1d   :  { %2837 = vmatprep.subr.bf16.mxu1 %v3345_v0  ;;  %2841 = vmatprep.mubr.msk.bf16.mxu1 %vm3346_vm0, %v3345_v0  ;;  %v3414_v3 = vld [vmem:[#allocation2] sm:$0xff]  ;;  %v3416_v4 = vld [vmem:[#allocation2 + $0x8] sm:$0xff]  ;;  %vm77_vm1 = vcmask 261120   ;;  %v3428_v9 = vld [vmem:[#allocation5] sm:$0xff]  ;;  %s3347_s11 = smov 104   ;;  %s3348_s12 = smov 120  }
  0x1e   :  { %2851 = vmatprep.subr.bf16.mxu0 %v3345_v0  ;;  %2853 = vmatprep.mubr.msk.bf16.mxu0 %vm3346_vm0, %v3345_v0  ;;  %v56_v5 = vpack.c.bf16 %v3416_v4, %v3414_v3  ;;  %v3425_v7 = vshrl.u32 %v61_v6, 7  ;;  %s3349_s13 = smov 96   ;;  %s3350_s14 = smov 112   ;;  %vm153_vm2 = vcmask 64512   ;;  %vm644_vm3 = vcmask 1043456  }
  0x1f   :  { %2838 = vmatpush3.bf16.msra.mxu1 %v3175_v1  ;;  %s3351_s15 = smov 64   ;;  %s3352_s20 = smov 16   ;;  %vm1050_vm4 = vcmask 130048   ;;  %vm1053_vm5 = vcmask 195584   ;;  %vm1266_vm6 = vcmask 523264  }
  0x20   :  { %2839 = vmatprep.subr.bf16.mxu1 %v3345_v0  ;;  %v63_v8 = vsub.s32 0, %v3425_v7  ;;  %s3353_s21 = smov 24  }
  0x22   :  { %v64_v11 = vrot.slane %v3428_v9, %v63_v8 }
  0x23   :  { %2840 = vmatpush3.bf16.msra.mxu1 %v3176_v2 }
  0x24   :  { %2845 = vmatprep.subr.bf16.mxu1 %v3345_v0 }
  0x26   :  { %2842 = vmatmul.mubr.msk.bf16.vlgmr.msra.gmra.mxu1 %vm77_vm1, %v56_v5 }
  0x27   :  { %2847 = vmatprep.mubr.msk.bf16.mxu1 %vm3346_vm0, %v3345_v0 }
  0xe6   :  { %v115_v10 = vpop.f32.mrf.mxu1 }
  0xe7   :  { %v116_v14 = vadd.f32 %v115_v10, %v64_v11 }
  0xe8   :  { %v2843_v12 = vpop.f32.mrf.mxu1 }
  0xe9   :  { %v142_v18 = vpack.c.bf16 %v116_v14, %v116_v14 }
  0xea   :  { %v118_v13 = vpop.f32.mrf.mxu1 }
  0xeb   :  { %v119_v15 = vadd.f32 %v118_v13, %v64_v11 }
  0xec   :  { %v2844_v16 = vpop.f32.mrf.mxu1 }
  0xed   :  { %v3125_v17 = vpack.i.bf16 %v119_v15, %v116_v14  ;;  %v143_v19 = vpack.c.bf16 %v119_v15, %v119_v15 }
  0xef   :  { %3126 = vrot.lane.b32.xlu1 %v3125_v17, %s3347_s11  ;;  %3116 = vrot.lane.b32.xlu0 %v3125_v17, %s3348_s12 }
  0xf3   :  { %151 = vrot.lane.b32.xlu1 %v142_v18, %s3349_s13  ;;  %3121 = vrot.lane.b32.xlu0 %v3125_v17, %s3350_s14 }
  0xf7   :  { %201 = vrot.lane.b32.xlu0 %v143_v19, %s3349_s13 }
 0x161   :  { %v3127_v20 = vpop.permute.xlu1 %3126  ;;  %v3117_v21 = vpop.permute.xlu0 %3116 }
 0x162   :  { %v3119_v22 = vunpack.i.h.bf16 %v3117_v21  ;;  %v3118_v23 = vunpack.i.l.bf16 %v3117_v21  ;;  %v3128_v31 = vunpack.i.l.bf16 %v3127_v20  ;;  %v3129_v34 = vunpack.i.h.bf16 %v3127_v20 }
 0x164   :  { %v3438_v24 = vpack.c.bf16 %v3119_v22, %v3119_v22  ;;  %v3440_v25 = vpack.c.bf16 %v3118_v23, %v3118_v23  ;;  %v3457_v37 = vpack.c.bf16 %v3128_v31, %v3128_v31  ;;  %v3460_v38 = vpack.c.bf16 %v3129_v34, %v3129_v34 }
 0x165   :  { %v152_v26 = vpop.permute.xlu1 %151  ;;  %v3122_v27 = vpop.permute.xlu0 %3121 }
 0x166   :  { %v158_v28 = vsel %vm153_vm2, %v152_v26, 0  ;;  %v3124_v29 = vunpack.i.h.bf16 %v3122_v27  ;;  %v3123_v30 = vunpack.i.l.bf16 %v3122_v27  ;;  %250 = vrot.lane.b32.xlu1 %v3440_v25, %s3349_s13  ;;  %299 = vrot.lane.b32.xlu0 %v3438_v24, %s3349_s13 }
 0x167   :  { %2846 = vmatpush3.bf16.xpose.msra.mxu1 %v158_v28 }
 0x168   :  { %v3447_v32 = vpack.c.bf16 %v3124_v29, %v3124_v29  ;;  %v3449_v33 = vpack.c.bf16 %v3123_v30, %v3123_v30  ;;  %2857 = vmatprep.subr.bf16.mxu1 %v3345_v0 }
 0x169   :  { %v202_v35 = vpop.permute.xlu0 %201 }
 0x16a   :  { %348 = vrot.lane.b32.xlu1 %v3449_v33, %s3349_s13  ;;  %397 = vrot.lane.b32.xlu0 %v3447_v32, %s3349_s13  ;;  %v207_v36 = vsel %vm153_vm2, %v202_v35, 0 }
 0x16b   :  { %2852 = vmatpush3.bf16.xpose.msra.mxu0 %v207_v36 }
 0x16c   :  { %2863 = vmatprep.subr.bf16.mxu0 %v3345_v0 }
 0x16e   :  { %2848 = vmatmul.mubr.msk.bf16.vlgmr.msra.gmra.mxu1 %vm153_vm2, %v142_v18  ;;  %446 = vrot.lane.b32.xlu1 %v3457_v37, %s3349_s13 }
 0x16f   :  { %495 = vrot.lane.b32.xlu0 %v3460_v38, %s3349_s13  ;;  %2859 = vmatprep.mubr.msk.bf16.mxu1 %vm3346_vm0, %v3345_v0 }
 0x172   :  { %688 = vrot.lane.b32.xlu1 %v143_v19, %s3351_s15  ;;  %2854 = vmatmul.mubr.msk.bf16.vlgmr.msra.gmra.mxu0 %vm153_vm2, %v143_v19 }
 0x173   :  { %639 = vrot.lane.b32.xlu0 %v142_v18, %s3351_s15  ;;  %2865 = vmatprep.mubr.msk.bf16.mxu0 %vm3346_vm0, %v3345_v0 }
 0x1d8   :  { %v251_v39 = vpop.permute.xlu1 %250  ;;  %v300_v40 = vpop.permute.xlu0 %299 }
 0x1d9   :  { %v256_v41 = vsel %vm153_vm2, %v251_v39, 0  ;;  %v305_v42 = vsel %vm153_vm2, %v300_v40, 0 }
 0x1da   :  { %2858 = vmatpush3.bf16.xpose.msra.mxu1 %v256_v41  ;;  %2864 = vmatpush3.bf16.xpose.msra.mxu0 %v305_v42 }
 0x1db   :  { %2869 = vmatprep.subr.bf16.mxu1 %v3345_v0  ;;  %2875 = vmatprep.subr.bf16.mxu0 %v3345_v0 }
 0x1dc   :  { %v349_v43 = vpop.permute.xlu1 %348  ;;  %v398_v44 = vpop.permute.xlu0 %397 }
 0x1dd   :  { %v354_v45 = vsel %vm153_vm2, %v349_v43, 0  ;;  %v403_v46 = vsel %vm153_vm2, %v398_v44, 0 }
 0x1e0   :  { %v447_v47 = vpop.permute.xlu1 %446 }
 0x1e1   :  { %2860 = vmatmul.mubr.msk.bf16.vlgmr.msra.gmra.mxu1 %vm153_vm2, %v3440_v25  ;;  %2866 = vmatmul.mubr.msk.bf16.vlgmr.msra.gmra.mxu0 %vm153_vm2, %v3438_v24  ;;  %v496_v48 = vpop.permute.xlu0 %495  ;;  %v452_v49 = vsel %vm153_vm2, %v447_v47, 0 }
 0x1e2   :  { %2870 = vmatpush3.bf16.xpose.msra.mxu1 %v354_v45  ;;  %2876 = vmatpush3.bf16.xpose.msra.mxu0 %v403_v46  ;;  %v501_v50 = vsel %vm153_vm2, %v496_v48, 0 }
 0x1e3   :  { %2871 = vmatprep.mubr.msk.bf16.mxu1 %vm3346_vm0, %v3345_v0  ;;  %2877 = vmatprep.mubr.msk.bf16.mxu0 %vm3346_vm0, %v3345_v0 }
 0x1e4   :  { %2881 = vmatprep.subr.bf16.mxu1 %v3345_v0  ;;  %2887 = vmatprep.subr.bf16.mxu0 %v3345_v0  ;;  %v689_v51 = vpop.permute.xlu1 %688 }
 0x1e5   :  { %v640_v52 = vpop.permute.xlu0 %639  ;;  %v694_v53 = vsel %vm644_vm3, %v689_v51, 0 }
 0x1e6   :  { %v646_v54 = vsel %vm644_vm3, %v640_v52, 0 }
 0x1e9   :  { %2872 = vmatmul.mubr.msk.bf16.vlgmr.msra.gmra.mxu1 %vm153_vm2, %v3449_v33  ;;  %2878 = vmatmul.mubr.msk.bf16.vlgmr.msra.gmra.mxu0 %vm153_vm2, %v3447_v32 }
 0x1ea   :  { %2882 = vmatpush3.bf16.xpose.msra.mxu1 %v452_v49  ;;  %2888 = vmatpush3.bf16.xpose.msra.mxu0 %v501_v50 }
 0x1eb   :  { %2883 = vmatprep.mubr.msk.bf16.mxu1 %vm3346_vm0, %v3345_v0  ;;  %2889 = vmatprep.mubr.msk.bf16.mxu0 %vm3346_vm0, %v3345_v0 }
 0x1ec   :  { %2893 = vmatprep.subr.bf16.mxu1 %v3345_v0  ;;  %2899 = vmatprep.subr.bf16.mxu0 %v3345_v0 }
 0x1f1   :  { %2884 = vmatmul.mubr.msk.bf16.vlgmr.msra.gmra.mxu1 %vm153_vm2, %v3457_v37  ;;  %2890 = vmatmul.mubr.msk.bf16.vlgmr.msra.gmra.mxu0 %vm153_vm2, %v3460_v38 }
 0x1f2   :  { %2894 = vmatpush3.bf16.msra.mxu1 %v646_v54  ;;  %2900 = vmatpush3.bf16.msra.mxu0 %v694_v53 }
 0x1f3   :  { %2895 = vmatprep.mubr.msk.bf16.mxu1 %vm3346_vm0, %v3345_v0  ;;  %2901 = vmatprep.mubr.msk.bf16.mxu0 %vm3346_vm0, %v3345_v0 }
 0x1f4   :  { %2905 = vmatprep.subr.bf16.mxu1 %v3345_v0  ;;  %2911 = vmatprep.subr.bf16.mxu0 %v3345_v0 }
 0x22e   :  { %v194_v55 = vpop.f32.mrf.mxu1 }
 0x22f   :  { %v543_v56 = vsel %vm153_vm2, %v194_v55, -inf }
 0x230   :  { %544 = vmax.xlane.f32.xlu1 %v543_v56  ;;  %v2849_v57 = vpop.f32.mrf.mxu1 }
 0x232   :  { %v197_v58 = vpop.f32.mrf.mxu1  ;;  %v243_v59 = vpop.f32.mrf.mxu0 }
 0x233   :  { %v546_v60 = vsel %vm153_vm2, %v243_v59, -inf }
 0x234   :  { %547 = vmax.xlane.f32.xlu0 %v546_v60  ;;  %v2850_v61 = vpop.f32.mrf.mxu1  ;;  %v2855_v62 = vpop.f32.mrf.mxu0 }
 0x236   :  { %v246_v63 = vpop.f32.mrf.mxu0 }
 0x238   :  { %v2856_v1 = vpop.f32.mrf.mxu0 }
 0x2a1   :  { %v292_v2 = vpop.f32.mrf.mxu1  ;;  %v341_v5 = vpop.f32.mrf.mxu0 }
 0x2a2   :  { %v552_v6 = vsel %vm153_vm2, %v341_v5, -inf  ;;  %v549_v10 = vsel %vm153_vm2, %v292_v2, -inf }
 0x2a3   :  { %v2867_v11 = vpop.f32.mrf.mxu0  ;;  %553 = vmax.xlane.f32.xlu1 %v552_v6  ;;  %550 = vmax.xlane.f32.xlu0 %v549_v10  ;;  %v2861_v12 = vpop.f32.mrf.mxu1 }
 0x2a5   :  { %v295_v13 = vpop.f32.mrf.mxu1  ;;  %v344_v14 = vpop.f32.mrf.mxu0 }
 0x2a7   :  { %v2862_v15 = vpop.f32.mrf.mxu1  ;;  %v2868_v16 = vpop.f32.mrf.mxu0 }
 0x2a9   :  { %v3518_v17 = vpop.f32.mrf.mxu1  ;;  %v439_v18 = vpop.f32.mrf.mxu0 }
 0x2aa   :  { %v558_v19 = vsel %vm153_vm2, %v439_v18, -inf  ;;  %v555_v20 = vsel %vm153_vm2, %v3518_v17, -inf }
 0x2ab   :  { %v2879_v21 = vpop.f32.mrf.mxu0  ;;  %559 = vmax.xlane.f32.xlu1 %v558_v19  ;;  %556 = vmax.xlane.f32.xlu0 %v555_v20  ;;  %v2873_v22 = vpop.f32.mrf.mxu1 }
 0x2ad   :  { %v393_v23 = vpop.f32.mrf.mxu1  ;;  %v442_v26 = vpop.f32.mrf.mxu0 }
 0x2af   :  { %v2874_v27 = vpop.f32.mrf.mxu1  ;;  %v2880_v28 = vpop.f32.mrf.mxu0 }
 0x2b1   :  { %v3523_v29 = vpop.f32.mrf.mxu1  ;;  %v537_v30 = vpop.f32.mrf.mxu0 }
 0x2b2   :  { %v564_v31 = vsel %vm153_vm2, %v537_v30, -inf  ;;  %v561_v34 = vsel %vm153_vm2, %v3523_v29, -inf }
 0x2b3   :  { %v2891_v35 = vpop.f32.mrf.mxu0  ;;  %565 = vmax.xlane.f32.xlu1 %v564_v31  ;;  %562 = vmax.xlane.f32.xlu0 %v561_v34  ;;  %v2885_v36 = vpop.f32.mrf.mxu1 }
 0x2b5   :  { %v491_v39 = vpop.f32.mrf.mxu1  ;;  %v540_v40 = vpop.f32.mrf.mxu0 }
 0x2b7   :  { %v2886_v41 = vpop.f32.mrf.mxu1  ;;  %v2892_v42 = vpop.f32.mrf.mxu0 }
 0x2b9   :  { %v545_v43 = vpop.xlane.xlu1 %544 }
 0x2ba   :  { %v567_v45 = vsub.f32 %v194_v55, %v545_v43 }
 0x2bc   :  { %v575_v47 = vmul.f32 1.442695, %v567_v45 }
 0x2bd   :  { %v548_v44 = vpop.xlane.xlu0 %547 }
 0x2be   :  { %v568_v46 = vsub.f32 %v243_v59, %v548_v44  ;;  %3195 = vpow2.f32 %v575_v47 }
 0x2c0   :  { %v577_v48 = vmul.f32 1.442695, %v568_v46 }
 0x2c2   :  { %3197 = vpow2.f32 %v577_v48 }
 0x2c4   :  { %736 = vrot.lane.b32.xlu1 %v3440_v25, %s3351_s15 }
 0x2c9   :  { %784 = vrot.lane.b32.xlu0 %v3438_v24, %s3351_s15 }
 0x2cb   :  { %v3196_v49 = vpop.eup %3195 }
 0x2cc   :  { %v591_v52 = vsel %vm153_vm2, %v3196_v49, 0.0 }
 0x2cf   :  { %v3198_v50 = vpop.eup %3197 }
 0x2d0   :  { %v594_v51 = vsel %vm153_vm2, %v3198_v50, 0.0 }
 0x2e8   :  { %595 = vadd.xlane.f32.xlu1 %v594_v51  ;;  %592 = vadd.xlane.f32.xlu0 %v591_v52 }
 0x2f9   :  { %832 = vrot.lane.b32.xlu1 %v3449_v33, %s3351_s15 }
 0x32c   :  { %v554_v24 = vpop.xlane.xlu1 %553  ;;  %v551_v25 = vpop.xlane.xlu0 %550 }
 0x32d   :  { %v570_v53 = vsub.f32 %v341_v5, %v554_v24  ;;  %v569_v54 = vsub.f32 %v292_v2, %v551_v25 }
 0x32f   :  { %v581_v55 = vmul.f32 1.442695, %v570_v53  ;;  %v579_v56 = vmul.f32 1.442695, %v569_v54 }
 0x331   :  { %3199 = vpow2.f32 %v581_v55 }
 0x332   :  { %3201 = vpow2.f32 %v579_v56 }
 0x334   :  { %v560_v57 = vpop.xlane.xlu1 %559  ;;  %v557_v12 = vpop.xlane.xlu0 %556 }
 0x335   :  { %v572_v58 = vsub.f32 %v439_v18, %v560_v57  ;;  %v571_v13 = vsub.f32 %v3518_v17, %v557_v12 }
 0x337   :  { %v585_v59 = vmul.f32 1.442695, %v572_v58  ;;  %v583_v15 = vmul.f32 1.442695, %v571_v13 }
 0x339   :  { %3203 = vpow2.f32 %v585_v59 }
 0x33c   :  { %v566_v60 = vpop.xlane.xlu1 %565  ;;  %v563_v14 = vpop.xlane.xlu0 %562 }
 0x33d   :  { %v574_v61 = vsub.f32 %v537_v30, %v566_v60  ;;  %v573_v16 = vsub.f32 %v3523_v29, %v563_v14 }
 0x33e   :  { %v3200_v62 = vpop.eup %3199 }
 0x33f   :  { %v3536_v63 = vpop.eup %3201  ;;  %v589_v1 = vmul.f32 1.442695, %v574_v61  ;;  %v600_v33 = vsel %vm153_vm2, %v3200_v62, 0.0  ;;  %v587_v18 = vmul.f32 1.442695, %v573_v16 }
 0x340   :  { %601 = vadd.xlane.f32.xlu1 %v600_v33  ;;  %v597_v2 = vsel %vm153_vm2, %v3536_v63, 0.0  ;;  %v737_v19 = vpop.permute.xlu1 %736  ;;  %v785_v20 = vpop.permute.xlu0 %784 }
 0x341   :  { %3205 = vpow2.f32 %v589_v1  ;;  %598 = vadd.xlane.f32.xlu0 %v597_v2  ;;  %v790_v34 = vsel %vm644_vm3, %v785_v20, 0  ;;  %v742_v35 = vsel %vm644_vm3, %v737_v19, 0 }
 0x342   :  { %3207 = vpow2.f32 %v583_v15 }
 0x343   :  { %3209 = vpow2.f32 %v587_v18 }
 0x346   :  { %v3541_v5 = vpop.eup %3203 }
 0x347   :  { %v606_v6 = vsel %vm153_vm2, %v3541_v5, 0.0 }
 0x348   :  { %607 = vadd.xlane.f32.xlu1 %v606_v6 }
 0x34e   :  { %v3545_v10 = vpop.eup %3205 }
 0x34f   :  { %v612_v11 = vsel %vm153_vm2, %v3545_v10, 0.0  ;;  %v3555_v23 = vpop.eup %3207 }
 0x350   :  { %613 = vadd.xlane.f32.xlu1 %v612_v11  ;;  %v3559_v17 = vpop.eup %3209 }
 0x357   :  { %880 = vrot.lane.b32.xlu0 %v3447_v32, %s3351_s15  ;;  %v603_v32 = vsel %vm153_vm2, %v3555_v23, 0.0 }
 0x361   :  { %928 = vrot.lane.b32.xlu1 %v3457_v37, %s3351_s15  ;;  %v609_v37 = vsel %vm153_vm2, %v3559_v17, 0.0 }
 0x371   :  { %v596_v21 = vpop.xlane.xlu1 %595  ;;  %v593_v22 = vpop.xlane.xlu0 %592 }
 0x372   :  { %3211 = vrcp.f32 %v596_v21 }
 0x373   :  { %3213 = vrcp.f32 %v593_v22 }
 0x375   :  { %v833_v36 = vpop.permute.xlu1 %832 }
 0x376   :  { %604 = vadd.xlane.f32.xlu0 %v603_v32 }
 0x37a   :  { %610 = vadd.xlane.f32.xlu0 %v609_v37 }
 0x37f   :  { %v3212_v26 = vpop.eup %3211 }
 0x380   :  { %v3214_v27 = vpop.eup %3213  ;;  %v624_v28 = vmul.f32 %v3212_v26, %v3198_v50 }
 0x381   :  { %v623_v29 = vmul.f32 %v3214_v27, %v3196_v49 }
 0x382   :  { %v632_v30 = vpack.c.bf16 %v624_v28, %v624_v28 }
 0x383   :  { %v631_v31 = vpack.c.bf16 %v623_v29, %v623_v29  ;;  %v3177_v29 = vld [vmem:[%s3970_s2 + $0x8] sm:$0xff]  }
 0x384   :  { %2902 = vmatmul.mubr.msk.bf16.vlgmr.msra.gmra.mxu0 %vm153_vm2, %v632_v30 }
 0x385   :  { %2896 = vmatmul.mubr.msk.bf16.vlgmr.msra.gmra.mxu1 %vm153_vm2, %v631_v31  ;;  %2912 = vmatpush3.bf16.msra.mxu0 %v790_v34 }
 0x386   :  { %2906 = vmatpush3.bf16.msra.mxu1 %v742_v35  ;;  %2907 = vmatprep.mubr.msk.bf16.mxu1 %vm3346_vm0, %v3345_v0  ;;  %v3178_v35 = vld [vmem:[%s3970_s2] sm:$0xff]  }
 0x387   :  { %2913 = vmatprep.mubr.msk.bf16.mxu0 %vm3346_vm0, %v3345_v0  ;;  %2917 = vmatprep.subr.bf16.mxu1 %v3345_v0 }
 0x388   :  { %2923 = vmatprep.subr.bf16.mxu0 %v3345_v0 }
 0x390   :  { %976 = vrot.lane.b32.xlu0 %v3460_v38, %s3351_s15  ;;  %v838_v38 = vsel %vm644_vm3, %v833_v36, 0 }
 0x3c9   :  { %v602_v39 = vpop.xlane.xlu1 %601 }
 0x3ca   :  { %3215 = vrcp.f32 %v602_v39  ;;  %v599_v40 = vpop.xlane.xlu0 %598 }
 0x3cb   :  { %3217 = vrcp.f32 %v599_v40 }
 0x3ce   :  { %v881_v45 = vpop.permute.xlu0 %880 }
 0x3cf   :  { %v886_v49 = vsel %vm644_vm3, %v881_v45, 0 }
 0x3d1   :  { %v608_v41 = vpop.xlane.xlu1 %607 }
 0x3d2   :  { %3219 = vrcp.f32 %v608_v41 }
 0x3d7   :  { %v3216_v42 = vpop.eup %3215 }
 0x3d8   :  { %v3218_v43 = vpop.eup %3217  ;;  %v626_v44 = vmul.f32 %v3216_v42, %v3200_v62 }
 0x3d9   :  { %v625_v46 = vmul.f32 %v3218_v43, %v3536_v63  ;;  %v614_v24 = vpop.xlane.xlu1 %613 }
 0x3da   :  { %v634_v47 = vpack.c.bf16 %v626_v44, %v626_v44  ;;  %3221 = vrcp.f32 %v614_v24 }
 0x3db   :  { %v633_v48 = vpack.c.bf16 %v625_v46, %v625_v46 }
 0x3dc   :  { %2914 = vmatmul.mubr.msk.bf16.vlgmr.msra.gmra.mxu0 %vm153_vm2, %v634_v47 }
 0x3dd   :  { %2908 = vmatmul.mubr.msk.bf16.vlgmr.msra.gmra.mxu1 %vm153_vm2, %v633_v48  ;;  %2924 = vmatpush3.bf16.msra.mxu0 %v886_v49  ;;  %v929_v61 = vpop.permute.xlu1 %928 }
 0x3de   :  { %2918 = vmatpush3.bf16.msra.mxu1 %v838_v38  ;;  %2925 = vmatprep.mubr.msk.bf16.mxu0 %vm3346_vm0, %v3345_v0  ;;  %v934_v1 = vsel %vm644_vm3, %v929_v61, 0 }
 0x3df   :  { %v3220_v50 = vpop.eup %3219  ;;  %2935 = vmatprep.subr.bf16.mxu0 %v3345_v0  ;;  %2919 = vmatprep.mubr.msk.bf16.mxu1 %vm3346_vm0, %v3345_v0 }
 0x3e0   :  { %v628_v51 = vmul.f32 %v3220_v50, %v3541_v5  ;;  %2929 = vmatprep.subr.bf16.mxu1 %v3345_v0 }
 0x3e2   :  { %v636_v52 = vpack.c.bf16 %v628_v51, %v628_v51 }
 0x3e4   :  { %2926 = vmatmul.mubr.msk.bf16.vlgmr.msra.gmra.mxu0 %vm153_vm2, %v636_v52 }
 0x3e5   :  { %2937 = vmatprep.mubr.msk.bf16.mxu0 %vm3346_vm0, %v3345_v0 }
 0x3e7   :  { %v3222_v53 = vpop.eup %3221 }
 0x3e8   :  { %v630_v55 = vmul.f32 %v3222_v53, %v3545_v10 }
 0x3ea   :  { %v638_v58 = vpack.c.bf16 %v630_v55, %v630_v55 }
 0x3ff   :  { %v605_v25 = vpop.xlane.xlu0 %604 }
 0x400   :  { %3223 = vrcp.f32 %v605_v25 }
 0x403   :  { %v611_v54 = vpop.xlane.xlu0 %610 }
 0x404   :  { %3225 = vrcp.f32 %v611_v54 }
 0x407   :  { %v977_v56 = vpop.permute.xlu0 %976 }
 0x408   :  { %v982_v57 = vsel %vm644_vm3, %v977_v56, 0 }
 0x409   :  { %2936 = vmatpush3.bf16.msra.mxu0 %v982_v57 }
 0x40a   :  { %2949 = vmatprep.subr.bf16.mxu0 %v3345_v0 }
 0x40c   :  { %2938 = vmatmul.mubr.msk.bf16.vlgmr.msra.gmra.mxu0 %vm153_vm2, %v638_v58 }
 0x40d   :  { %v3224_v59 = vpop.eup %3223  ;;  %2953 = vmatprep.mubr.msk.bf16.mxu0 %vm3346_vm0, %v3345_v0 }
 0x40e   :  { %v627_v60 = vmul.f32 %v3224_v59, %v3555_v23 }
 0x410   :  { %v635_v62 = vpack.c.bf16 %v627_v60, %v627_v60 }
 0x411   :  { %v3226_v63 = vpop.eup %3225 }
 0x412   :  { %2920 = vmatmul.mubr.msk.bf16.vlgmr.msra.gmra.mxu1 %vm153_vm2, %v635_v62  ;;  %v629_v33 = vmul.f32 %v3226_v63, %v3559_v17  ;;  %v1063_v62 = vsub.s32 1, %v3425_v7 }
 0x413   :  { %2930 = vmatpush3.bf16.msra.mxu1 %v934_v1  ;;  %2931 = vmatprep.mubr.msk.bf16.mxu1 %vm3346_vm0, %v3345_v0 }
 0x414   :  { %2941 = vmatprep.subr.bf16.mxu1 %v3345_v0  ;;  %v637_v2 = vpack.c.bf16 %v629_v33, %v629_v33  ;;  %v1064_v63 = vrot.slane %v3428_v9, %v1063_v62 }
 0x41a   :  { %2932 = vmatmul.mubr.msk.bf16.vlgmr.msra.gmra.mxu1 %vm153_vm2, %v637_v2 }
 0x41b   :  { %2945 = vmatprep.mubr.msk.bf16.mxu1 %vm3346_vm0, %v3345_v0  ;;  %2942 = vmatpush3.bf16.msra.mxu1 %v3177_v29 }
 0x41c   :  { %2943 = vmatprep.subr.bf16.mxu1 %v3345_v0 }
 0x41f   :  { %2944 = vmatpush3.bf16.msra.mxu1 %v3178_v35 }
 0x420   :  { %2957 = vmatprep.subr.bf16.mxu1 %v3345_v0 }
 0x444   :  { %v730_v5 = vpop.f32.mrf.mxu0 }
 0x445   :  { %v682_v6 = vpop.f32.mrf.mxu1 }
 0x446   :  { %v2903_v10 = vpop.f32.mrf.mxu0 }
 0x447   :  { %v2897_v11 = vpop.f32.mrf.mxu1 }
 0x448   :  { %v733_v12 = vpop.f32.mrf.mxu0 }
 0x449   :  { %v685_v13 = vpop.f32.mrf.mxu1 }
 0x44a   :  { %v2904_v14 = vpop.f32.mrf.mxu0 }
 0x44b   :  { %v2898_v15 = vpop.f32.mrf.mxu1 }
 0x49c   :  { %v826_v16 = vpop.f32.mrf.mxu0 }
 0x49d   :  { %v778_v18 = vpop.f32.mrf.mxu1 }
 0x49e   :  { %v3130_v19 = vpack.i.bf16 %v826_v16, %v778_v18  ;;  %v2915_v20 = vpop.f32.mrf.mxu0 }
 0x49f   :  { %v2909_v21 = vpop.f32.mrf.mxu1 }
 0x4a0   :  { %3131 = vrot.lane.b32.xlu1 %v3130_v19, %s3343_s25  ;;  %v829_v22 = vpop.f32.mrf.mxu0 }
 0x4a1   :  { %v781_v23 = vpop.f32.mrf.mxu1 }
 0x4a2   :  { %v2916_v32 = vpop.f32.mrf.mxu0 }
 0x4a3   :  { %v2910_v17 = vpop.f32.mrf.mxu1 }
 0x4a4   :  { %v922_v37 = vpop.f32.mrf.mxu0  ;;  %v3180_v17 = vld [vmem:[%s3971_s3] sm:$0xff]  }
 0x4a6   :  { %v2927_v26 = vpop.f32.mrf.mxu0 }
 0x4a8   :  { %v925_v27 = vpop.f32.mrf.mxu0 }
 0x4aa   :  { %v2928_v28 = vpop.f32.mrf.mxu0 }
 0x4cc   :  { %v1018_v30 = vpop.f32.mrf.mxu0 }
 0x4ce   :  { %v2939_v31 = vpop.f32.mrf.mxu0 }
 0x4d0   :  { %v1021_v34 = vpop.f32.mrf.mxu0 }
 0x4d1   :  { %v1152_v34 = vsub.s32 2, %v3425_v7 }
 0x4d2   :  { %v874_v36 = vpop.f32.mrf.mxu1  ;;  %v2940_v39 = vpop.f32.mrf.mxu0 }
 0x4d3   :  { %v3135_v40 = vpack.i.bf16 %v922_v37, %v874_v36  ;;  %v3181_v37 = vld [vmem:[%s3972_s4 + $0x18] sm:$0xff]   ;;  %v1153_v39 = vrot.slane %v3428_v9, %v1152_v34 }
 0x4d4   :  { %v2921_v41 = vpop.f32.mrf.mxu1 }
 0x4d5   :  { %3136 = vrot.lane.b32.xlu0 %v3135_v40, %s3352_s20  ;;  %v1158_v40 = vsub.s32 3, %v3425_v7 }
 0x4d6   :  { %v877_v42 = vpop.f32.mrf.mxu1 }
 0x4d8   :  { %v2922_v43 = vpop.f32.mrf.mxu1 }
 0x4da   :  { %v970_v44 = vpop.f32.mrf.mxu1 }
 0x4db   :  { %v3140_v45 = vpack.i.bf16 %v1018_v30, %v970_v44  ;;  %v1159_v44 = vrot.slane %v3428_v9, %v1158_v40 }
 0x4dc   :  { %v2933_v46 = vpop.f32.mrf.mxu1 }
 0x4dd   :  { %3141 = vrot.lane.b32.xlu1 %v3140_v45, %s3353_s21 }
 0x4de   :  { %v973_v47 = vpop.f32.mrf.mxu1 }
 0x4e0   :  { %v2934_v48 = vpop.f32.mrf.mxu1 }
 0x512   :  { %v3132_v49 = vpop.permute.xlu1 %3131 }
 0x513   :  { %v3134_v50 = vunpack.i.h.bf16 %v3132_v49  ;;  %v3133_v51 = vunpack.i.l.bf16 %v3132_v49  ;;  %v3182_v49 = vld [vmem:[%s3972_s4 + $0x10] sm:$0xff]  }
 0x515   :  { %v1049_v53 = vsel %vm153_vm2, %v730_v5, %v3134_v50  ;;  %v1048_v54 = vsel %vm153_vm2, %v682_v6, %v3133_v51  ;;  %v3184_v50 = vld [vmem:[%s3972_s4] sm:$0xff]   ;;  %v1169_v51 = vsub.s32 4, %v3425_v7 }
 0x547   :  { %v3137_v38 = vpop.permute.xlu0 %3136 }
 0x548   :  { %v3139_v52 = vunpack.i.h.bf16 %v3137_v38  ;;  %v3138_v24 = vunpack.i.l.bf16 %v3137_v38  ;;  %v3183_v38 = vld [vmem:[%s3972_s4 + $0x8] sm:$0xff]  }
 0x54a   :  { %v1052_v57 = vsel %vm1050_vm4, %v1049_v53, %v3139_v52  ;;  %v1051_v58 = vsel %vm1050_vm4, %v1048_v54, %v3138_v24  ;;  %v1170_v52 = vrot.slane %v3428_v9, %v1169_v51 }
 0x54f   :  { %v3142_v25 = vpop.permute.xlu1 %3141 }
 0x550   :  { %v3144_v55 = vunpack.i.h.bf16 %v3142_v25  ;;  %v3143_v56 = vunpack.i.l.bf16 %v3142_v25 }
 0x552   :  { %v1055_v59 = vsel %vm1053_vm5, %v1052_v57, %v3144_v55  ;;  %v1054_v60 = vsel %vm1053_vm5, %v1051_v58, %v3143_v56 }
 0x553   :  { %v1056_v61 = vpack.c.bf16 %v1055_v59, %v1054_v60  ;;  %v1240_v60 = vsub.s32 5, %v3425_v7 }
 0x555   :  { %2946 = vmatmul.mubr.msk.bf16.vlgmr.msra.gmra.mxu1 %vm77_vm1, %v1056_v61  ;;  %v1241_v61 = vrot.slane %v3428_v9, %v1240_v60 }
 0x556   :  { %2965 = vmatprep.mubr.msk.bf16.mxu1 %vm3346_vm0, %v3345_v0  ;;  %2958 = vmatpush3.bf16.msra.mxu1 %v3181_v37 }
 0x557   :  { %2959 = vmatprep.subr.bf16.mxu1 %v3345_v0 }
 0x55a   :  { %2960 = vmatpush3.bf16.msra.mxu1 %v3182_v49  ;;  %v3711_v49 = vld [vmem:[#allocation5 + $0x8] sm:$0xff] }
 0x55b   :  { %2961 = vmatprep.subr.bf16.mxu1 %v3345_v0 }
 0x55e   :  { %2962 = vmatpush3.bf16.msra.mxu1 %v3183_v38 }
 0x55f   :  { %2963 = vmatprep.subr.bf16.mxu1 %v3345_v0 }
 0x562   :  { %2964 = vmatpush3.bf16.msra.mxu1 %v3184_v50 }
 0x563   :  { %2983 = vmatprep.subr.bf16.mxu1 %v3345_v0 }
 0x615   :  { %v1114_v1 = vpop.f32.mrf.mxu1 }
 0x616   :  { %v1115_v33 = vadd.f32 %v1114_v1, %v1064_v63 }
 0x617   :  { %v2947_v2 = vpop.f32.mrf.mxu1 }
 0x618   :  { %v1121_v5 = vadd.f32 %v1115_v33, %v3414_v3 }
 0x619   :  { %v1117_v6 = vpop.f32.mrf.mxu1 }
 0x61a   :  { %v1118_v10 = vadd.f32 %v1117_v6, %v1064_v63  ;;  %v1123_v11 = vsel %vm77_vm1, %v1121_v5, 0.0 }
 0x61b   :  { %1124 = vadd.xlane.f32.xlu0 %v1123_v11  ;;  %v2948_v12 = vpop.f32.mrf.mxu1 }
 0x61c   :  { %v1122_v13 = vadd.f32 %v1118_v10, %v3416_v4  ;;  %v3179_v4 = vld [vmem:[%s3971_s3 + $0x8] sm:$0xff]  }
 0x61d   :  { %2950 = vmatpush3.bf16.msra.mxu0 %v3179_v4  ;;  %v3186_v4 = vld [vmem:[%s3969_s1 + $0x10] sm:$0xff]  }
 0x61e   :  { %v1126_v14 = vsel %vm77_vm1, %v1122_v13, 0.0  ;;  %2951 = vmatprep.subr.bf16.mxu0 %v3345_v0 }
 0x61f   :  { %1127 = vadd.xlane.f32.xlu1 %v1126_v14 }
 0x621   :  { %2952 = vmatpush3.bf16.msra.mxu0 %v3180_v17 }
 0x622   :  { %2969 = vmatprep.subr.bf16.mxu0 %v3345_v0 }
 0x6a4   :  { %v1125_v15 = vpop.xlane.xlu0 %1124 }
 0x6a5   :  { %v1130_v16 = vmul.f32 0.03125, %v1125_v15 }
 0x6a7   :  { %v1132_v18 = vsub.f32 %v1121_v5, %v1130_v16 }
 0x6a8   :  { %v1128_v19 = vpop.xlane.xlu1 %1127 }
 0x6a9   :  { %v1131_v20 = vmul.f32 0.03125, %v1128_v19  ;;  %v1134_v21 = vmul.f32 %v1132_v18, %v1132_v18 }
 0x6ab   :  { %v1133_v22 = vsub.f32 %v1122_v13, %v1131_v20  ;;  %v1136_v3 = vsel %vm77_vm1, %v1134_v21, 0.0 }
 0x6ac   :  { %1137 = vadd.xlane.f32.xlu0 %v1136_v3 }
 0x6ad   :  { %v1135_v23 = vmul.f32 %v1133_v22, %v1133_v22 }
 0x6af   :  { %v1139_v32 = vsel %vm77_vm1, %v1135_v23, 0.0 }
 0x6b0   :  { %1140 = vadd.xlane.f32.xlu0 %v1139_v32  ;;  %v3185_v32 = vld [vmem:[%s3969_s1 + $0x18] sm:$0xff]  }
 0x735   :  { %v1138_v26 = vpop.xlane.xlu0 %1137 }
 0x736   :  { %v1142_v27 = vmul.f32 0.03125, %v1138_v26 }
 0x738   :  { %v1144_v28 = vadd.f32 1e-05, %v1142_v27 }
 0x739   :  { %v1141_v29 = vpop.xlane.xlu0 %1140 }
 0x73a   :  { %3227 = vrsqrt.f32 %v1144_v28  ;;  %v1143_v30 = vmul.f32 0.03125, %v1141_v29 }
 0x73c   :  { %v1145_v31 = vadd.f32 1e-05, %v1143_v30  ;;  %v1341_v30 = vsub.s32 6, %v3425_v7 }
 0x73e   :  { %3229 = vrsqrt.f32 %v1145_v31 }
 0x747   :  { %v3228_v35 = vpop.eup %3227 }
 0x748   :  { %v1148_v36 = vmul.f32 %v3228_v35, %v1132_v18 }
 0x74a   :  { %v1154_v43 = vmul.f32 %v1153_v39, %v1148_v36  ;;  %v1342_v36 = vrot.slane %v3428_v9, %v1341_v30 }
 0x74b   :  { %v3230_v41 = vpop.eup %3229 }
 0x74c   :  { %v1149_v42 = vmul.f32 %v3230_v41, %v1133_v22  ;;  %v1160_v46 = vadd.f32 %v1159_v44, %v1154_v43 }
 0x74e   :  { %v1155_v45 = vmul.f32 %v1153_v39, %v1149_v42  ;;  %v1347_v39 = vsub.s32 7, %v3425_v7 }
 0x750   :  { %v1161_v47 = vadd.f32 %v1159_v44, %v1155_v45  ;;  %v1348_v44 = vrot.slane %v3428_v9, %v1347_v39  ;;  %v1362_v9 = vrot.slane %v3711_v49, %v63_v8 }
 0x752   :  { %v1162_v48 = vpack.c.bf16 %v1161_v47, %v1160_v46 }
 0x754   :  { %2954 = vmatmul.mubr.msk.bf16.vlgmr.msra.gmra.mxu0 %vm77_vm1, %v1162_v48 }
 0x755   :  { %2973 = vmatprep.mubr.msk.bf16.mxu0 %vm3346_vm0, %v3345_v0  ;;  %2970 = vmatpush3.bf16.msra.mxu0 %v3185_v32 }
 0x756   :  { %2971 = vmatprep.subr.bf16.mxu0 %v3345_v0 }
 0x759   :  { %2972 = vmatpush3.bf16.msra.mxu0 %v3186_v4 }
 0x75a   :  { %2977 = vmatprep.subr.bf16.mxu0 %v3345_v0 }
 0x814   :  { %v1220_v24 = vpop.f32.mrf.mxu0 }
 0x815   :  { %v1221_v53 = vadd.f32 %v1220_v24, %v1170_v52 }
 0x816   :  { %v2955_v25 = vpop.f32.mrf.mxu0 }
 0x817   :  { %v1227_v57 = vmax.f32 %v1221_v53, 0.0 }
 0x818   :  { %v1223_v54 = vpop.f32.mrf.mxu0 }
 0x819   :  { %v1224_v55 = vadd.f32 %v1223_v54, %v1170_v52 }
 0x81a   :  { %v2956_v56 = vpop.f32.mrf.mxu0 }
 0x81b   :  { %v1228_v58 = vmax.f32 %v1224_v55, 0.0 }
 0x81d   :  { %v1229_v59 = vpack.c.bf16 %v1228_v58, %v1227_v57 }
 0x81f   :  { %2966 = vmatmul.mubr.msk.bf16.vlgmr.msra.gmra.mxu1 %vm1266_vm6, %v1229_v59 }
 0x820   :  { %2985 = vmatprep.mubr.msk.bf16.mxu1 %vm3346_vm0, %v3345_v0 }
 0x8df   :  { %v1304_v63 = vpop.f32.mrf.mxu1 }
 0x8e0   :  { %v1305_v1 = vadd.f32 %v1304_v63, %v1241_v61 }
 0x8e1   :  { %v2967_v33 = vpop.f32.mrf.mxu1 }
 0x8e2   :  { %v1311_v2 = vadd.f32 %v1305_v1, %v1160_v46 }
 0x8e3   :  { %v1307_v5 = vpop.f32.mrf.mxu1 }
 0x8e4   :  { %v1308_v6 = vadd.f32 %v1307_v5, %v1241_v61  ;;  %v1313_v10 = vsel %vm77_vm1, %v1311_v2, 0.0 }
 0x8e5   :  { %1314 = vadd.xlane.f32.xlu1 %v1313_v10  ;;  %v2968_v11 = vpop.f32.mrf.mxu1 }
 0x8e6   :  { %v1312_v12 = vadd.f32 %v1308_v6, %v1161_v47 }
 0x8e8   :  { %v1316_v13 = vsel %vm77_vm1, %v1312_v12, 0.0 }
 0x8e9   :  { %1317 = vadd.xlane.f32.xlu0 %v1316_v13 }
 0x96e   :  { %v1315_v14 = vpop.xlane.xlu1 %1314 }
 0x96f   :  { %v1319_v15 = vmul.f32 0.03125, %v1315_v14 }
 0x971   :  { %v1321_v16 = vsub.f32 %v1311_v2, %v1319_v15 }
 0x972   :  { %v1318_v18 = vpop.xlane.xlu0 %1317 }
 0x973   :  { %v1320_v19 = vmul.f32 0.03125, %v1318_v18  ;;  %v1323_v20 = vmul.f32 %v1321_v16, %v1321_v16 }
 0x975   :  { %v1322_v21 = vsub.f32 %v1312_v12, %v1320_v19  ;;  %v1325_v22 = vsel %vm77_vm1, %v1323_v20, 0.0 }
 0x976   :  { %1326 = vadd.xlane.f32.xlu1 %v1325_v22 }
 0x977   :  { %v1324_v3 = vmul.f32 %v1322_v21, %v1322_v21 }
 0x979   :  { %v1328_v23 = vsel %vm77_vm1, %v1324_v3, 0.0 }
 0x97a   :  { %1329 = vadd.xlane.f32.xlu0 %v1328_v23 }
 0x9ff   :  { %v1327_v17 = vpop.xlane.xlu1 %1326 }
 0xa00   :  { %v1331_v37 = vmul.f32 0.03125, %v1327_v17 }
 0xa02   :  { %v1333_v26 = vadd.f32 1e-05, %v1331_v37 }
 0xa03   :  { %v1330_v27 = vpop.xlane.xlu0 %1329 }
 0xa04   :  { %3231 = vrsqrt.f32 %v1333_v26  ;;  %v1332_v28 = vmul.f32 0.03125, %v1330_v27 }
 0xa06   :  { %v1334_v29 = vadd.f32 1e-05, %v1332_v28 }
 0xa08   :  { %3233 = vrsqrt.f32 %v1334_v29 }
 0xa11   :  { %v3232_v31 = vpop.eup %3231 }
 0xa12   :  { %v1337_v35 = vmul.f32 %v3232_v31, %v1321_v16 }
 0xa14   :  { %v1343_v43 = vmul.f32 %v1342_v36, %v1337_v35 }
 0xa15   :  { %v3234_v41 = vpop.eup %3233 }
 0xa16   :  { %v1338_v42 = vmul.f32 %v3234_v41, %v1322_v21  ;;  %v3702_v46 = vadd.f32 %v1348_v44, %v1343_v43 }
 0xa18   :  { %v1344_v45 = vmul.f32 %v1342_v36, %v1338_v42 }
 0xa1a   :  { %v3704_v47 = vadd.f32 %v1348_v44, %v1344_v45 }
 0xa1c   :  { %v1353_v48 = vpack.c.bf16 %v3704_v47, %v3702_v46 }
 0xa1e   :  { %2974 = vmatmul.mubr.msk.bf16.vlgmr.msra.gmra.mxu0 %vm77_vm1, %v1353_v48 }
 0xa1f   :  { %2979 = vmatprep.mubr.msk.bf16.mxu0 %vm3346_vm0, %v3345_v0 }
 0xade   :  { %v1412_v38 = vpop.f32.mrf.mxu0 }
 0xadf   :  { %v1413_v24 = vadd.f32 %v1412_v38, %v1362_v9 }
 0xae0   :  { %v2975_v50 = vpop.f32.mrf.mxu0 }
 0xae1   :  { %v1439_v56 = vpack.c.bf16 %v1413_v24, %v1413_v24 }
 0xae2   :  { %v1415_v52 = vpop.f32.mrf.mxu0 }
 0xae3   :  { %v1416_v25 = vadd.f32 %v1415_v52, %v1362_v9 }
 0xae4   :  { %v2976_v53 = vpop.f32.mrf.mxu0 }
 0xae5   :  { %v3150_v54 = vpack.i.bf16 %v1416_v25, %v1413_v24  ;;  %v1440_v55 = vpack.c.bf16 %v1416_v25, %v1416_v25 }
 0xae7   :  { %3151 = vrot.lane.b32.xlu0 %v3150_v54, %s3350_s14  ;;  %3146 = vrot.lane.b32.xlu1 %v3150_v54, %s3348_s12 }
 0xaeb   :  { %3156 = vrot.lane.b32.xlu1 %v3150_v54, %s3347_s11  ;;  %1497 = vrot.lane.b32.xlu0 %v1440_v55, %s3349_s13 }
 0xaef   :  { %1448 = vrot.lane.b32.xlu1 %v1439_v56, %s3349_s13 }
 0xb59   :  { %v3152_v57 = vpop.permute.xlu0 %3151  ;;  %v3147_v8 = vpop.permute.xlu1 %3146 }
 0xb5a   :  { %v3149_v58 = vunpack.i.h.bf16 %v3147_v8  ;;  %v3148_v59 = vunpack.i.l.bf16 %v3147_v8  ;;  %v3154_v61 = vunpack.i.h.bf16 %v3152_v57  ;;  %v3153_v63 = vunpack.i.l.bf16 %v3152_v57 }
 0xb5c   :  { %v3721_v1 = vpack.c.bf16 %v3149_v58, %v3149_v58  ;;  %v3723_v33 = vpack.c.bf16 %v3148_v59, %v3148_v59  ;;  %v3730_v10 = vpack.c.bf16 %v3154_v61, %v3154_v61  ;;  %v3732_v11 = vpack.c.bf16 %v3153_v63, %v3153_v63 }
 0xb5d   :  { %v3157_v2 = vpop.permute.xlu1 %3156  ;;  %v1498_v5 = vpop.permute.xlu0 %1497 }
 0xb5e   :  { %v1503_v6 = vsel %vm153_vm2, %v1498_v5, 0  ;;  %1546 = vrot.lane.b32.xlu1 %v3723_v33, %s3349_s13  ;;  %1595 = vrot.lane.b32.xlu0 %v3721_v1, %s3349_s13  ;;  %v3159_v12 = vunpack.i.h.bf16 %v3157_v2  ;;  %v3158_v13 = vunpack.i.l.bf16 %v3157_v2 }
 0xb5f   :  { %2984 = vmatpush3.bf16.xpose.msra.mxu1 %v1503_v6 }
 0xb60   :  { %2995 = vmatprep.subr.bf16.mxu1 %v3345_v0  ;;  %v3740_v16 = vpack.c.bf16 %v3159_v12, %v3159_v12  ;;  %v3742_v18 = vpack.c.bf16 %v3158_v13, %v3158_v13 }
 0xb61   :  { %v1449_v14 = vpop.permute.xlu1 %1448 }
 0xb62   :  { %v1454_v15 = vsel %vm153_vm2, %v1449_v14, 0  ;;  %1644 = vrot.lane.b32.xlu1 %v3732_v11, %s3349_s13  ;;  %1693 = vrot.lane.b32.xlu0 %v3730_v10, %s3349_s13 }
 0xb63   :  { %2978 = vmatpush3.bf16.xpose.msra.mxu0 %v1454_v15 }
 0xb64   :  { %2989 = vmatprep.subr.bf16.mxu0 %v3345_v0 }
 0xb66   :  { %1742 = vrot.lane.b32.xlu1 %v3742_v18, %s3349_s13  ;;  %1791 = vrot.lane.b32.xlu0 %v3740_v16, %s3349_s13 }
 0xb67   :  { %2986 = vmatmul.mubr.msk.bf16.vlgmr.msra.gmra.mxu1 %vm153_vm2, %v1440_v55 }
 0xb68   :  { %2997 = vmatprep.mubr.msk.bf16.mxu1 %vm3346_vm0, %v3345_v0 }
 0xb6a   :  { %2980 = vmatmul.mubr.msk.bf16.vlgmr.msra.gmra.mxu0 %vm153_vm2, %v1439_v56  ;;  %1983 = vrot.lane.b32.xlu1 %v1440_v55, %s3351_s15 }
 0xb6b   :  { %1935 = vrot.lane.b32.xlu0 %v1439_v56, %s3351_s15  ;;  %2991 = vmatprep.mubr.msk.bf16.mxu0 %vm3346_vm0, %v3345_v0 }
 0xbd0   :  { %v1547_v19 = vpop.permute.xlu1 %1546  ;;  %v1596_v20 = vpop.permute.xlu0 %1595 }
 0xbd1   :  { %v1552_v21 = vsel %vm153_vm2, %v1547_v19, 0  ;;  %v1601_v22 = vsel %vm153_vm2, %v1596_v20, 0 }
 0xbd2   :  { %2990 = vmatpush3.bf16.xpose.msra.mxu0 %v1552_v21  ;;  %2996 = vmatpush3.bf16.xpose.msra.mxu1 %v1601_v22 }
 0xbd3   :  { %3001 = vmatprep.subr.bf16.mxu0 %v3345_v0  ;;  %3007 = vmatprep.subr.bf16.mxu1 %v3345_v0 }
 0xbd4   :  { %v1645_v3 = vpop.permute.xlu1 %1644  ;;  %v1694_v23 = vpop.permute.xlu0 %1693 }
 0xbd5   :  { %v1650_v32 = vsel %vm153_vm2, %v1645_v3, 0  ;;  %v1699_v4 = vsel %vm153_vm2, %v1694_v23, 0 }
 0xbd8   :  { %v1743_v17 = vpop.permute.xlu1 %1742  ;;  %v1792_v37 = vpop.permute.xlu0 %1791 }
 0xbd9   :  { %2992 = vmatmul.mubr.msk.bf16.vlgmr.msra.gmra.mxu0 %vm153_vm2, %v3723_v33  ;;  %2998 = vmatmul.mubr.msk.bf16.vlgmr.msra.gmra.mxu1 %vm153_vm2, %v3721_v1  ;;  %v1748_v26 = vsel %vm153_vm2, %v1743_v17, 0  ;;  %v1797_v27 = vsel %vm153_vm2, %v1792_v37, 0 }
 0xbda   :  { %3002 = vmatpush3.bf16.xpose.msra.mxu0 %v1650_v32  ;;  %3008 = vmatpush3.bf16.xpose.msra.mxu1 %v1699_v4 }
 0xbdb   :  { %3003 = vmatprep.mubr.msk.bf16.mxu0 %vm3346_vm0, %v3345_v0  ;;  %3009 = vmatprep.mubr.msk.bf16.mxu1 %vm3346_vm0, %v3345_v0 }
 0xbdc   :  { %3013 = vmatprep.subr.bf16.mxu0 %v3345_v0  ;;  %3019 = vmatprep.subr.bf16.mxu1 %v3345_v0  ;;  %v1984_v28 = vpop.permute.xlu1 %1983 }
 0xbdd   :  { %v1936_v29 = vpop.permute.xlu0 %1935  ;;  %v1989_v31 = vsel %vm644_vm3, %v1984_v28, 0 }
 0xbde   :  { %v1941_v35 = vsel %vm644_vm3, %v1936_v29, 0 }
 0xbe1   :  { %3004 = vmatmul.mubr.msk.bf16.vlgmr.msra.gmra.mxu0 %vm153_vm2, %v3732_v11  ;;  %3010 = vmatmul.mubr.msk.bf16.vlgmr.msra.gmra.mxu1 %vm153_vm2, %v3730_v10 }
 0xbe2   :  { %3014 = vmatpush3.bf16.xpose.msra.mxu0 %v1748_v26  ;;  %3020 = vmatpush3.bf16.xpose.msra.mxu1 %v1797_v27 }
 0xbe3   :  { %3015 = vmatprep.mubr.msk.bf16.mxu0 %vm3346_vm0, %v3345_v0  ;;  %3021 = vmatprep.mubr.msk.bf16.mxu1 %vm3346_vm0, %v3345_v0 }
 0xbe4   :  { %3025 = vmatprep.subr.bf16.mxu0 %v3345_v0  ;;  %3031 = vmatprep.subr.bf16.mxu1 %v3345_v0 }
 0xbe9   :  { %3016 = vmatmul.mubr.msk.bf16.vlgmr.msra.gmra.mxu0 %vm153_vm2, %v3742_v18  ;;  %3022 = vmatmul.mubr.msk.bf16.vlgmr.msra.gmra.mxu1 %vm153_vm2, %v3740_v16 }
 0xbea   :  { %3026 = vmatpush3.bf16.msra.mxu0 %v1941_v35  ;;  %3032 = vmatpush3.bf16.msra.mxu1 %v1989_v31 }
 0xbeb   :  { %3027 = vmatprep.mubr.msk.bf16.mxu0 %vm3346_vm0, %v3345_v0  ;;  %3033 = vmatprep.mubr.msk.bf16.mxu1 %vm3346_vm0, %v3345_v0 }
 0xbec   :  { %3037 = vmatprep.subr.bf16.mxu0 %v3345_v0  ;;  %3043 = vmatprep.subr.bf16.mxu1 %v3345_v0 }
 0xc27   :  { %v1539_v36 = vpop.f32.mrf.mxu1 }
 0xc28   :  { %v1842_v41 = vsel %vm153_vm2, %v1539_v36, -inf }
 0xc29   :  { %1843 = vmax.xlane.f32.xlu0 %v1842_v41  ;;  %v2987_v42 = vpop.f32.mrf.mxu1 }
 0xc2a   :  { %v1490_v43 = vpop.f32.mrf.mxu0 }
 0xc2b   :  { %v1542_v44 = vpop.f32.mrf.mxu1  ;;  %v1839_v45 = vsel %vm153_vm2, %v1490_v43, -inf }
 0xc2c   :  { %1840 = vmax.xlane.f32.xlu1 %v1839_v45  ;;  %v2981_v48 = vpop.f32.mrf.mxu0 }
 0xc2d   :  { %v2988_v38 = vpop.f32.mrf.mxu1 }
 0xc2e   :  { %v1493_v9 = vpop.f32.mrf.mxu0 }
 0xc30   :  { %v2982_v50 = vpop.f32.mrf.mxu0 }
 0xc99   :  { %v1588_v52 = vpop.f32.mrf.mxu0  ;;  %v1637_v24 = vpop.f32.mrf.mxu1 }
 0xc9a   :  { %v1845_v25 = vsel %vm153_vm2, %v1588_v52, -inf  ;;  %v1848_v53 = vsel %vm153_vm2, %v1637_v24, -inf }
 0xc9b   :  { %v2993_v54 = vpop.f32.mrf.mxu0  ;;  %1846 = vmax.xlane.f32.xlu0 %v1845_v25  ;;  %1849 = vmax.xlane.f32.xlu1 %v1848_v53  ;;  %v2999_v55 = vpop.f32.mrf.mxu1 }
 0xc9d   :  { %v1591_v56 = vpop.f32.mrf.mxu0  ;;  %v1640_v57 = vpop.f32.mrf.mxu1 }
 0xc9f   :  { %v2994_v8 = vpop.f32.mrf.mxu0  ;;  %v3000_v58 = vpop.f32.mrf.mxu1 }
 0xca1   :  { %v3801_v59 = vpop.f32.mrf.mxu0  ;;  %v1735_v61 = vpop.f32.mrf.mxu1 }
 0xca2   :  { %v1851_v63 = vsel %vm153_vm2, %v3801_v59, -inf  ;;  %v1854_v2 = vsel %vm153_vm2, %v1735_v61, -inf }
 0xca3   :  { %v3005_v5 = vpop.f32.mrf.mxu0  ;;  %1852 = vmax.xlane.f32.xlu0 %v1851_v63  ;;  %1855 = vmax.xlane.f32.xlu1 %v1854_v2  ;;  %v3011_v6 = vpop.f32.mrf.mxu1 }
 0xca5   :  { %v1689_v12 = vpop.f32.mrf.mxu0  ;;  %v1738_v13 = vpop.f32.mrf.mxu1 }
 0xca7   :  { %v3006_v14 = vpop.f32.mrf.mxu0  ;;  %v3012_v15 = vpop.f32.mrf.mxu1 }
 0xca9   :  { %v3806_v19 = vpop.f32.mrf.mxu0  ;;  %v1833_v20 = vpop.f32.mrf.mxu1 }
 0xcaa   :  { %v1857_v21 = vsel %vm153_vm2, %v3806_v19, -inf  ;;  %v1860_v22 = vsel %vm153_vm2, %v1833_v20, -inf }
 0xcab   :  { %v3017_v3 = vpop.f32.mrf.mxu0  ;;  %1858 = vmax.xlane.f32.xlu0 %v1857_v21  ;;  %1861 = vmax.xlane.f32.xlu1 %v1860_v22  ;;  %v3023_v23 = vpop.f32.mrf.mxu1 }
 0xcad   :  { %v1787_v32 = vpop.f32.mrf.mxu0  ;;  %v1836_v4 = vpop.f32.mrf.mxu1 }
 0xcaf   :  { %v3018_v17 = vpop.f32.mrf.mxu0  ;;  %v3024_v37 = vpop.f32.mrf.mxu1 }
 0xcb2   :  { %v1844_v26 = vpop.xlane.xlu0 %1843 }
 0xcb3   :  { %v1864_v28 = vsub.f32 %v1539_v36, %v1844_v26 }
 0xcb5   :  { %v1841_v27 = vpop.xlane.xlu1 %1840  ;;  %v1873_v31 = vmul.f32 1.442695, %v1864_v28 }
 0xcb6   :  { %v1863_v29 = vsub.f32 %v1490_v43, %v1841_v27 }
 0xcb7   :  { %3235 = vpow2.f32 %v1873_v31 }
 0xcb8   :  { %v1871_v35 = vmul.f32 1.442695, %v1863_v29 }
 0xcba   :  { %3237 = vpow2.f32 %v1871_v35 }
 0xcbc   :  { %2031 = vrot.lane.b32.xlu1 %v3723_v33, %s3351_s15 }
 0xcc1   :  { %2079 = vrot.lane.b32.xlu0 %v3721_v1, %s3351_s15 }
 0xcc4   :  { %v3236_v41 = vpop.eup %3235 }
 0xcc5   :  { %v1890_v45 = vsel %vm153_vm2, %v3236_v41, 0.0 }
 0xcc7   :  { %v3238_v42 = vpop.eup %3237 }
 0xcc8   :  { %v1887_v44 = vsel %vm153_vm2, %v3238_v42, 0.0 }
 0xce0   :  { %1888 = vadd.xlane.f32.xlu0 %v1887_v44  ;;  %1891 = vadd.xlane.f32.xlu1 %v1890_v45 }
 0xcf1   :  { %2127 = vrot.lane.b32.xlu1 %v3732_v11, %s3351_s15 }
 0xd24   :  { %v1847_v1 = vpop.xlane.xlu0 %1846  ;;  %v1850_v33 = vpop.xlane.xlu1 %1849 }
 0xd25   :  { %v1865_v48 = vsub.f32 %v1588_v52, %v1847_v1  ;;  %v1866_v36 = vsub.f32 %v1637_v24, %v1850_v33 }
 0xd27   :  { %v1875_v43 = vmul.f32 1.442695, %v1865_v48  ;;  %v1877_v38 = vmul.f32 1.442695, %v1866_v36 }
 0xd29   :  { %3239 = vpow2.f32 %v1875_v43 }
 0xd2a   :  { %3241 = vpow2.f32 %v1877_v38 }
 0xd2c   :  { %v1856_v9 = vpop.xlane.xlu1 %1855  ;;  %v1853_v63 = vpop.xlane.xlu0 %1852 }
 0xd2d   :  { %v1868_v50 = vsub.f32 %v1735_v61, %v1856_v9  ;;  %v1867_v2 = vsub.f32 %v3801_v59, %v1853_v63 }
 0xd2f   :  { %v1881_v25 = vmul.f32 1.442695, %v1868_v50  ;;  %v1879_v6 = vmul.f32 1.442695, %v1867_v2 }
 0xd31   :  { %3243 = vpow2.f32 %v1881_v25 }
 0xd34   :  { %v1862_v53 = vpop.xlane.xlu1 %1861  ;;  %v1859_v5 = vpop.xlane.xlu0 %1858 }
 0xd35   :  { %v1870_v54 = vsub.f32 %v1833_v20, %v1862_v53  ;;  %v1869_v12 = vsub.f32 %v3806_v19, %v1859_v5 }
 0xd36   :  { %v3240_v55 = vpop.eup %3239 }
 0xd37   :  { %v3242_v56 = vpop.eup %3241  ;;  %v1885_v57 = vmul.f32 1.442695, %v1870_v54  ;;  %v1893_v8 = vsel %vm153_vm2, %v3240_v55, 0.0  ;;  %v1883_v13 = vmul.f32 1.442695, %v1869_v12 }
 0xd38   :  { %1894 = vadd.xlane.f32.xlu0 %v1893_v8  ;;  %v1896_v11 = vsel %vm153_vm2, %v3242_v56, 0.0  ;;  %v2080_v14 = vpop.permute.xlu0 %2079  ;;  %v2032_v15 = vpop.permute.xlu1 %2031 }
 0xd39   :  { %1897 = vadd.xlane.f32.xlu1 %v1896_v11  ;;  %3245 = vpow2.f32 %v1885_v57  ;;  %v2037_v37 = vsel %vm644_vm3, %v2032_v15, 0  ;;  %v2085_v26 = vsel %vm644_vm3, %v2080_v14, 0 }
 0xd3a   :  { %3247 = vpow2.f32 %v1879_v6 }
 0xd3b   :  { %3249 = vpow2.f32 %v1883_v13 }
 0xd3e   :  { %v3821_v52 = vpop.eup %3243 }
 0xd3f   :  { %v1902_v24 = vsel %vm153_vm2, %v3821_v52, 0.0 }
 0xd40   :  { %1903 = vadd.xlane.f32.xlu1 %v1902_v24 }
 0xd46   :  { %v3825_v58 = vpop.eup %3245 }
 0xd47   :  { %v1908_v61 = vsel %vm153_vm2, %v3825_v58, 0.0  ;;  %v3835_v20 = vpop.eup %3247 }
 0xd48   :  { %1909 = vadd.xlane.f32.xlu1 %v1908_v61  ;;  %v3839_v59 = vpop.eup %3249 }
 0xd4e   :  { %2175 = vrot.lane.b32.xlu0 %v3730_v10, %s3351_s15  ;;  %v1899_v10 = vsel %vm153_vm2, %v3835_v20, 0.0 }
 0xd59   :  { %2223 = vrot.lane.b32.xlu1 %v3742_v18, %s3351_s15  ;;  %v1905_v18 = vsel %vm153_vm2, %v3839_v59, 0.0 }
 0xd69   :  { %v1889_v21 = vpop.xlane.xlu0 %1888  ;;  %v1892_v22 = vpop.xlane.xlu1 %1891 }
 0xd6a   :  { %3251 = vrcp.f32 %v1889_v21 }
 0xd6b   :  { %3253 = vrcp.f32 %v1892_v22 }
 0xd6d   :  { %1900 = vadd.xlane.f32.xlu0 %v1899_v10  ;;  %v2128_v27 = vpop.permute.xlu1 %2127 }
 0xd6e   :  { %v2133_v48 = vsel %vm644_vm3, %v2128_v27, 0 }
 0xd71   :  { %1906 = vadd.xlane.f32.xlu0 %v1905_v18 }
 0xd77   :  { %v3252_v19 = vpop.eup %3251 }
 0xd78   :  { %v3254_v3 = vpop.eup %3253  ;;  %v1919_v23 = vmul.f32 %v3252_v19, %v3238_v42 }
 0xd79   :  { %v1920_v32 = vmul.f32 %v3254_v3, %v3236_v41 }
 0xd7a   :  { %v1927_v4 = vpack.c.bf16 %v1919_v23, %v1919_v23 }
 0xd7b   :  { %v1928_v17 = vpack.c.bf16 %v1920_v32, %v1920_v32 }
 0xd7c   :  { %3028 = vmatmul.mubr.msk.bf16.vlgmr.msra.gmra.mxu0 %vm153_vm2, %v1927_v4 }
 0xd7d   :  { %3034 = vmatmul.mubr.msk.bf16.vlgmr.msra.gmra.mxu1 %vm153_vm2, %v1928_v17  ;;  %3038 = vmatpush3.bf16.msra.mxu0 %v2037_v37 }
 0xd7e   :  { %3044 = vmatpush3.bf16.msra.mxu1 %v2085_v26  ;;  %3039 = vmatprep.mubr.msk.bf16.mxu0 %vm3346_vm0, %v3345_v0 }
 0xd7f   :  { %3045 = vmatprep.mubr.msk.bf16.mxu1 %vm3346_vm0, %v3345_v0  ;;  %3049 = vmatprep.subr.bf16.mxu0 %v3345_v0 }
 0xd80   :  { %3055 = vmatprep.subr.bf16.mxu1 %v3345_v0 }
 0xd87   :  { %2271 = vrot.lane.b32.xlu0 %v3740_v16, %s3351_s15 }
 0xdc1   :  { %v1895_v28 = vpop.xlane.xlu0 %1894 }
 0xdc2   :  { %3255 = vrcp.f32 %v1895_v28  ;;  %v1898_v29 = vpop.xlane.xlu1 %1897  ;;  %v3187_v28 = vld [vmem:[%s3970_s2 + $0x18] sm:$0xff]  }
 0xdc3   :  { %3257 = vrcp.f32 %v1898_v29 }
 0xdc5   :  { %v2176_v45 = vpop.permute.xlu0 %2175 }
 0xdc6   :  { %v2181_v16 = vsel %vm644_vm3, %v2176_v45, 0 }
 0xdc9   :  { %v1904_v31 = vpop.xlane.xlu1 %1903 }
 0xdca   :  { %3259 = vrcp.f32 %v1904_v31 }
 0xdcf   :  { %v3256_v35 = vpop.eup %3255 }
 0xdd0   :  { %v3258_v41 = vpop.eup %3257  ;;  %v1921_v42 = vmul.f32 %v3256_v35, %v3240_v55 }
 0xdd1   :  { %v1922_v44 = vmul.f32 %v3258_v41, %v3242_v56  ;;  %v1910_v9 = vpop.xlane.xlu1 %1909 }
 0xdd2   :  { %v1929_v1 = vpack.c.bf16 %v1921_v42, %v1921_v42  ;;  %3261 = vrcp.f32 %v1910_v9 }
 0xdd3   :  { %v1930_v33 = vpack.c.bf16 %v1922_v44, %v1922_v44  ;;  %v3188_v44 = vld [vmem:[%s3970_s2 + $0x10] sm:$0xff]  }
 0xdd4   :  { %3040 = vmatmul.mubr.msk.bf16.vlgmr.msra.gmra.mxu0 %vm153_vm2, %v1929_v1 }
 0xdd5   :  { %3046 = vmatmul.mubr.msk.bf16.vlgmr.msra.gmra.mxu1 %vm153_vm2, %v1930_v33  ;;  %3050 = vmatpush3.bf16.msra.mxu0 %v2133_v48 }
 0xdd6   :  { %3056 = vmatpush3.bf16.msra.mxu1 %v2181_v16  ;;  %3057 = vmatprep.mubr.msk.bf16.mxu1 %vm3346_vm0, %v3345_v0 }
 0xdd7   :  { %3067 = vmatprep.subr.bf16.mxu1 %v3345_v0  ;;  %3051 = vmatprep.mubr.msk.bf16.mxu0 %vm3346_vm0, %v3345_v0  ;;  %v3260_v36 = vpop.eup %3259 }
 0xdd8   :  { %3061 = vmatprep.subr.bf16.mxu0 %v3345_v0  ;;  %v1924_v43 = vmul.f32 %v3260_v36, %v3821_v52  ;;  %v2224_v52 = vpop.permute.xlu1 %2223 }
 0xdda   :  { %v1932_v38 = vpack.c.bf16 %v1924_v43, %v1924_v43 }
 0xddd   :  { %3058 = vmatmul.mubr.msk.bf16.vlgmr.msra.gmra.mxu1 %vm153_vm2, %v1932_v38 }
 0xdde   :  { %3069 = vmatprep.mubr.msk.bf16.mxu1 %vm3346_vm0, %v3345_v0 }
 0xddf   :  { %v3262_v25 = vpop.eup %3261 }
 0xde0   :  { %v1926_v54 = vmul.f32 %v3262_v25, %v3825_v58  ;;  %v2229_v58 = vsel %vm644_vm3, %v2224_v52, 0 }
 0xde2   :  { %v1934_v57 = vpack.c.bf16 %v1926_v54, %v1926_v54 }
 0xdf6   :  { %v1901_v50 = vpop.xlane.xlu0 %1900 }
 0xdf7   :  { %3263 = vrcp.f32 %v1901_v50 }
 0xdfa   :  { %v1907_v53 = vpop.xlane.xlu0 %1906 }
 0xdfb   :  { %3265 = vrcp.f32 %v1907_v53 }
 0xdfe   :  { %v2272_v55 = vpop.permute.xlu0 %2271 }
 0xdff   :  { %v2277_v56 = vsel %vm644_vm3, %v2272_v55, 0 }
 0xe00   :  { %3068 = vmatpush3.bf16.msra.mxu1 %v2277_v56 }
 0xe01   :  { %3081 = vmatprep.subr.bf16.mxu1 %v3345_v0 }
 0xe03   :  { %3070 = vmatmul.mubr.msk.bf16.vlgmr.msra.gmra.mxu1 %vm153_vm2, %v1934_v57 }
 0xe04   :  { %v3264_v8 = vpop.eup %3263  ;;  %3085 = vmatprep.mubr.msk.bf16.mxu1 %vm3346_vm0, %v3345_v0 }
 0xe05   :  { %v1923_v11 = vmul.f32 %v3264_v8, %v3835_v20 }
 0xe07   :  { %v1931_v24 = vpack.c.bf16 %v1923_v11, %v1923_v11 }
 0xe08   :  { %v3266_v61 = vpop.eup %3265 }
 0xe09   :  { %3052 = vmatmul.mubr.msk.bf16.vlgmr.msra.gmra.mxu0 %vm153_vm2, %v1931_v24  ;;  %v1925_v63 = vmul.f32 %v3266_v61, %v3839_v59 }
 0xe0a   :  { %3062 = vmatpush3.bf16.msra.mxu0 %v2229_v58  ;;  %3063 = vmatprep.mubr.msk.bf16.mxu0 %vm3346_vm0, %v3345_v0 }
 0xe0b   :  { %3073 = vmatprep.subr.bf16.mxu0 %v3345_v0  ;;  %v1933_v2 = vpack.c.bf16 %v1925_v63, %v1925_v63 }
 0xe11   :  { %3064 = vmatmul.mubr.msk.bf16.vlgmr.msra.gmra.mxu0 %vm153_vm2, %v1933_v2 }
 0xe12   :  { %3077 = vmatprep.mubr.msk.bf16.mxu0 %vm3346_vm0, %v3345_v0  ;;  %3074 = vmatpush3.bf16.msra.mxu0 %v3187_v28  ;;  %v3191_v28 = vld [vmem:[%s3972_s4 + $0x38] sm:$0xff]  }
 0xe13   :  { %3075 = vmatprep.subr.bf16.mxu0 %v3345_v0 }
 0xe16   :  { %3076 = vmatpush3.bf16.msra.mxu0 %v3188_v44 }
 0xe17   :  { %3089 = vmatprep.subr.bf16.mxu0 %v3345_v0 }
 0xe3c   :  { %v1977_v5 = vpop.f32.mrf.mxu0 }
 0xe3d   :  { %v2025_v6 = vpop.f32.mrf.mxu1 }
 0xe3e   :  { %v3029_v12 = vpop.f32.mrf.mxu0 }
 0xe3f   :  { %v3035_v13 = vpop.f32.mrf.mxu1 }
 0xe40   :  { %v1980_v14 = vpop.f32.mrf.mxu0 }
 0xe41   :  { %v2028_v15 = vpop.f32.mrf.mxu1 }
 0xe42   :  { %v3030_v20 = vpop.f32.mrf.mxu0 }
 0xe43   :  { %v3036_v21 = vpop.f32.mrf.mxu1 }
 0xe94   :  { %v2073_v22 = vpop.f32.mrf.mxu0 }
 0xe95   :  { %v2121_v10 = vpop.f32.mrf.mxu1 }
 0xe96   :  { %v3160_v18 = vpack.i.bf16 %v2121_v10, %v2073_v22  ;;  %v3041_v59 = vpop.f32.mrf.mxu0 }
 0xe97   :  { %v3047_v19 = vpop.f32.mrf.mxu1 }
 0xe98   :  { %3161 = vrot.lane.b32.xlu1 %v3160_v18, %s3343_s25  ;;  %v2076_v3 = vpop.f32.mrf.mxu0 }
 0xe99   :  { %v2124_v23 = vpop.f32.mrf.mxu1 }
 0xe9a   :  { %v3042_v32 = vpop.f32.mrf.mxu0 }
 0xe9b   :  { %v3048_v4 = vpop.f32.mrf.mxu1 }
 0xe9d   :  { %v2217_v17 = vpop.f32.mrf.mxu1 }
 0xe9f   :  { %v3059_v37 = vpop.f32.mrf.mxu1 }
 0xea1   :  { %v2220_v26 = vpop.f32.mrf.mxu1 }
 0xea3   :  { %v3060_v27 = vpop.f32.mrf.mxu1 }
 0xea4   :  { %v3190_v27 = vld [vmem:[%s3971_s3 + $0x10] sm:$0xff]  }
 0xec3   :  { %v2313_v29 = vpop.f32.mrf.mxu1 }
 0xec5   :  { %v3071_v31 = vpop.f32.mrf.mxu1 }
 0xec7   :  { %v2316_v35 = vpop.f32.mrf.mxu1 }
 0xec9   :  { %v2169_v41 = vpop.f32.mrf.mxu0  ;;  %v3072_v42 = vpop.f32.mrf.mxu1 }
 0xeca   :  { %v3165_v45 = vpack.i.bf16 %v2217_v17, %v2169_v41 }
 0xecb   :  { %v3053_v1 = vpop.f32.mrf.mxu0 }
 0xecc   :  { %3166 = vrot.lane.b32.xlu0 %v3165_v45, %s3352_s20 }
 0xecd   :  { %v2172_v33 = vpop.f32.mrf.mxu0 }
 0xece   :  { %v2446_v33 = vrot.slane %v3711_v49, %v1152_v34  ;;  %v3193_v34 = vld [vmem:[%s3972_s4 + $0x28] sm:$0xff]  }
 0xecf   :  { %v3054_v48 = vpop.f32.mrf.mxu0 }
 0xed1   :  { %v2265_v16 = vpop.f32.mrf.mxu0 }
 0xed2   :  { %v3170_v36 = vpack.i.bf16 %v2313_v29, %v2265_v16 }
 0xed3   :  { %v3065_v43 = vpop.f32.mrf.mxu0 }
 0xed4   :  { %3171 = vrot.lane.b32.xlu1 %v3170_v36, %s3353_s21  ;;  %v2452_v43 = vrot.slane %v3711_v49, %v1158_v40  ;;  %v3194_v40 = vld [vmem:[%s3972_s4 + $0x20] sm:$0xff]  }
 0xed5   :  { %v2268_v38 = vpop.f32.mrf.mxu0 }
 0xed7   :  { %v3066_v9 = vpop.f32.mrf.mxu0 }
 0xf0a   :  { %v3162_v50 = vpop.permute.xlu1 %3161 }
 0xf0b   :  { %v3164_v53 = vunpack.i.h.bf16 %v3162_v50  ;;  %v3163_v54 = vunpack.i.l.bf16 %v3162_v50 }
 0xf0d   :  { %v2344_v8 = vsel %vm153_vm2, %v2025_v6, %v3164_v53  ;;  %v2343_v11 = vsel %vm153_vm2, %v1977_v5, %v3163_v54  ;;  %v2358_v5 = vrot.slane %v3711_v49, %v1063_v62  ;;  %v3192_v53 = vld [vmem:[%s3972_s4 + $0x30] sm:$0xff]   ;;  %v2464_v54 = vrot.slane %v3711_v49, %v1169_v51  ;;  %s3354_s4 = smov [#allocation7]  }
 0xf0e   :  { %s2652_s29 = sshll.u32 %s3354_s4, 4  ;;  %s2653_s29 = int_to_ptr.vmem [resolvable:$true] %s2652_s29 }
 0xf0f   :  { %s3315_s30 = scalar_lea.vmem %s2653_s29, 256  ;;  %p3320_p11 = scmp.lt.s32.totalorder %s2653_s29, %s2653_s29 }
 0xf10   :  { %p3316_p10 = scmp.ne.s32.totalorder %s2653_s29, %s3315_s30  ;;  %p3321_p12 = scmp.lt.s32.totalorder %s3315_s30, %s3315_s30 }
 0xf12   :  { %p3322_p13 = por %p3321_p12, %p3320_p11 }
 0xf14   :  { %p3323_p0 = pnand %p3322_p13, %p3316_p10 }
 0xf3e   :  { %v3167_v25 = vpop.permute.xlu0 %3166 }
 0xf3f   :  { %v3169_v55 = vunpack.i.h.bf16 %v3167_v25  ;;  %v3168_v56 = vunpack.i.l.bf16 %v3167_v25 }
 0xf41   :  { %v2346_v61 = vsel %vm1050_vm4, %v2344_v8, %v3169_v55  ;;  %v2345_v58 = vsel %vm1050_vm4, %v2343_v11, %v3168_v56 }
 0xf46   :  { %v3172_v57 = vpop.permute.xlu1 %3171 }
 0xf47   :  { %v3174_v52 = vunpack.i.h.bf16 %v3172_v57  ;;  %v3173_v24 = vunpack.i.l.bf16 %v3172_v57 }
 0xf49   :  { %v2348_v63 = vsel %vm1053_vm5, %v2346_v61, %v3174_v52  ;;  %v2347_v2 = vsel %vm1053_vm5, %v2345_v58, %v3173_v24 }
 0xf4a   :  { %v2349_v12 = vpack.c.bf16 %v2348_v63, %v2347_v2 }
 0xf4c   :  { %3078 = vmatmul.mubr.msk.bf16.vlgmr.msra.gmra.mxu0 %vm77_vm1, %v2349_v12 }
 0xf4d   :  { %3097 = vmatprep.mubr.msk.bf16.mxu0 %vm3346_vm0, %v3345_v0  ;;  %3090 = vmatpush3.bf16.msra.mxu0 %v3191_v28 }
 0xf4e   :  { %3091 = vmatprep.subr.bf16.mxu0 %v3345_v0 }
 0xf51   :  { %3092 = vmatpush3.bf16.msra.mxu0 %v3192_v53 }
 0xf52   :  { %3093 = vmatprep.subr.bf16.mxu0 %v3345_v0 }
 0xf55   :  { %3094 = vmatpush3.bf16.msra.mxu0 %v3193_v34 }
 0xf56   :  { %3095 = vmatprep.subr.bf16.mxu0 %v3345_v0 }
 0xf59   :  { %3096 = vmatpush3.bf16.msra.mxu0 %v3194_v40 }
0x100c   :  { %v2408_v6 = vpop.f32.mrf.mxu0 }
0x100d   :  { %v2409_v13 = vadd.f32 %v2408_v6, %v2358_v5 }
0x100e   :  { %v3079_v14 = vpop.f32.mrf.mxu0 }
0x100f   :  { %v2415_v15 = vadd.f32 %v2409_v13, %v3702_v46 }
0x1010   :  { %v2411_v20 = vpop.f32.mrf.mxu0 }
0x1011   :  { %v2412_v21 = vadd.f32 %v2411_v20, %v2358_v5  ;;  %v2417_v22 = vsel %vm77_vm1, %v2415_v15, 0.0 }
0x1012   :  { %2418 = vadd.xlane.f32.xlu0 %v2417_v22  ;;  %v3080_v10 = vpop.f32.mrf.mxu0 }
0x1013   :  { %v2416_v18 = vadd.f32 %v2412_v21, %v3704_v47  ;;  %v3189_v47 = vld [vmem:[%s3971_s3 + $0x18] sm:$0xff]  }
0x1014   :  { %3082 = vmatpush3.bf16.msra.mxu1 %v3189_v47  ;;  %v2636_v47 = vrot.slane %v3711_v49, %v1341_v30 }
0x1015   :  { %v2420_v59 = vsel %vm77_vm1, %v2416_v18, 0.0  ;;  %3083 = vmatprep.subr.bf16.mxu1 %v3345_v0  ;;  %v2536_v0 = vrot.slane %v3711_v49, %v1240_v60 }
0x1016   :  { %2421 = vadd.xlane.f32.xlu1 %v2420_v59 }
0x1018   :  { %3084 = vmatpush3.bf16.msra.mxu1 %v3190_v27 }
0x109b   :  { %v2419_v19 = vpop.xlane.xlu0 %2418 }
0x109c   :  { %v2423_v3 = vmul.f32 0.03125, %v2419_v19 }
0x109e   :  { %v2425_v23 = vsub.f32 %v2415_v15, %v2423_v3 }
0x109f   :  { %v2422_v62 = vpop.xlane.xlu1 %2421 }
0x10a0   :  { %v2424_v32 = vmul.f32 0.03125, %v2422_v62  ;;  %v2427_v4 = vmul.f32 %v2425_v23, %v2425_v23 }
0x10a2   :  { %v2426_v17 = vsub.f32 %v2416_v18, %v2424_v32  ;;  %v2429_v46 = vsel %vm77_vm1, %v2427_v4, 0.0 }
0x10a3   :  { %2430 = vadd.xlane.f32.xlu0 %v2429_v46 }
0x10a4   :  { %v2428_v37 = vmul.f32 %v2426_v17, %v2426_v17 }
0x10a6   :  { %v2432_v26 = vsel %vm77_vm1, %v2428_v37, 0.0 }
0x10a7   :  { %2433 = vadd.xlane.f32.xlu0 %v2432_v26 }
0x112c   :  { %v2431_v29 = vpop.xlane.xlu0 %2430 }
0x112d   :  { %v2435_v31 = vmul.f32 0.03125, %v2431_v29  ;;  %v2642_v29 = vrot.slane %v3711_v49, %v1347_v39 }
0x112f   :  { %v2437_v35 = vadd.f32 1e-05, %v2435_v31 }
0x1130   :  { %v2434_v41 = vpop.xlane.xlu0 %2433 }
0x1131   :  { %3267 = vrsqrt.f32 %v2437_v35  ;;  %v2436_v42 = vmul.f32 0.03125, %v2434_v41 }
0x1133   :  { %v2438_v44 = vadd.f32 1e-05, %v2436_v42 }
0x1135   :  { %3269 = vrsqrt.f32 %v2438_v44 }
0x113e   :  { %v3268_v45 = vpop.eup %3267 }
0x113f   :  { %v2441_v1 = vmul.f32 %v3268_v45, %v2425_v23 }
0x1141   :  { %v2447_v36 = vmul.f32 %v2446_v33, %v2441_v1 }
0x1142   :  { %v3270_v48 = vpop.eup %3269 }
0x1143   :  { %v2442_v16 = vmul.f32 %v3270_v48, %v2426_v17  ;;  %v2453_v9 = vadd.f32 %v2452_v43, %v2447_v36 }
0x1145   :  { %v2448_v38 = vmul.f32 %v2446_v33, %v2442_v16 }
0x1147   :  { %v2454_v50 = vadd.f32 %v2452_v43, %v2448_v38 }
0x1149   :  { %v2455_v25 = vpack.c.bf16 %v2454_v50, %v2453_v9 }
0x114b   :  { %3086 = vmatmul.mubr.msk.bf16.vlgmr.msra.gmra.mxu1 %vm77_vm1, %v2455_v25 }
0x120b   :  { %v2514_v55 = vpop.f32.mrf.mxu1 }
0x120c   :  { %v2515_v57 = vadd.f32 %v2514_v55, %v2464_v54 }
0x120d   :  { %v3087_v56 = vpop.f32.mrf.mxu1 }
0x120e   :  { %v2521_v24 = vmax.f32 %v2515_v57, 0.0 }
0x120f   :  { %v2517_v8 = vpop.f32.mrf.mxu1 }
0x1210   :  { %v2518_v11 = vadd.f32 %v2517_v8, %v2464_v54 }
0x1211   :  { %v3088_v52 = vpop.f32.mrf.mxu1 }
0x1212   :  { %v2522_v61 = vmax.f32 %v2518_v11, 0.0 }
0x1214   :  { %v2523_v58 = vpack.c.bf16 %v2522_v61, %v2521_v24 }
0x1216   :  { %3098 = vmatmul.mubr.msk.bf16.vlgmr.msra.gmra.mxu0 %vm1266_vm6, %v2523_v58 }
0x12d6   :  { %v2598_v63 = vpop.f32.mrf.mxu0 }
0x12d7   :  { %v2599_v2 = vadd.f32 %v2598_v63, %v2536_v0 }
0x12d8   :  { %v3099_v12 = vpop.f32.mrf.mxu0 }
0x12d9   :  { %v2605_v5 = vadd.f32 %v2599_v2, %v2453_v9 }
0x12da   :  { %v2601_v51 = vpop.f32.mrf.mxu0 }
0x12db   :  { %v2602_v6 = vadd.f32 %v2601_v51, %v2536_v0  ;;  %v2607_v13 = vsel %vm77_vm1, %v2605_v5, 0.0 }
0x12dc   :  { %2608 = vadd.xlane.f32.xlu1 %v2607_v13  ;;  %v3100_v14 = vpop.f32.mrf.mxu0 }
0x12dd   :  { %v2606_v15 = vadd.f32 %v2602_v6, %v2454_v50 }
0x12df   :  { %v2610_v20 = vsel %vm77_vm1, %v2606_v15, 0.0 }
0x12e0   :  { %2611 = vadd.xlane.f32.xlu0 %v2610_v20 }
0x1365   :  { %v2609_v21 = vpop.xlane.xlu1 %2608 }
0x1366   :  { %v2613_v22 = vmul.f32 0.03125, %v2609_v21 }
0x1368   :  { %v2615_v10 = vsub.f32 %v2605_v5, %v2613_v22 }
0x1369   :  { %v2612_v18 = vpop.xlane.xlu0 %2611 }
0x136a   :  { %v2614_v59 = vmul.f32 0.03125, %v2612_v18  ;;  %v2617_v60 = vmul.f32 %v2615_v10, %v2615_v10 }
0x136c   :  { %v2616_v19 = vsub.f32 %v2606_v15, %v2614_v59  ;;  %v2619_v3 = vsel %vm77_vm1, %v2617_v60, 0.0 }
0x136d   :  { %2620 = vadd.xlane.f32.xlu1 %v2619_v3 }
0x136e   :  { %v2618_v23 = vmul.f32 %v2616_v19, %v2616_v19 }
0x1370   :  { %v2622_v62 = vsel %vm77_vm1, %v2618_v23, 0.0 }
0x1371   :  { %2623 = vadd.xlane.f32.xlu0 %v2622_v62 }
0x13f6   :  { %v2621_v32 = vpop.xlane.xlu1 %2620 }
0x13f7   :  { %v2625_v4 = vmul.f32 0.03125, %v2621_v32 }
0x13f9   :  { %v2627_v17 = vadd.f32 1e-05, %v2625_v4 }
0x13fa   :  { %v2624_v46 = vpop.xlane.xlu0 %2623 }
0x13fb   :  { %3271 = vrsqrt.f32 %v2627_v17  ;;  %v2626_v37 = vmul.f32 0.03125, %v2624_v46 }
0x13fd   :  { %v2628_v26 = vadd.f32 1e-05, %v2626_v37 }
0x13ff   :  { %3273 = vrsqrt.f32 %v2628_v26 }
0x1408   :  { %v3272_v27 = vpop.eup %3271 }
0x1409   :  { %v2631_v28 = vmul.f32 %v3272_v27, %v2615_v10 }
0x140b   :  { %v2637_v31 = vmul.f32 %v2636_v47, %v2631_v28 }
0x140c   :  { %v3274_v35 = vpop.eup %3273 }
0x140d   :  { %v2632_v41 = vmul.f32 %v3274_v35, %v2616_v19  ;;  %v2643_v42 = vadd.f32 %v2642_v29, %v2637_v31 }
0x140f   :  { %v2638_v44 = vmul.f32 %v2636_v47, %v2632_v41  ;;  %2645 = vst.msk [vmem:[#allocation7] sm:$0xff] %vm77_vm1, %v2643_v42 }
0x1411   :  { %v2644_v45 = vadd.f32 %v2642_v29, %v2638_v44 }
0x1413   :  { %2646 = vst.msk [vmem:[#allocation7 + $0x8] sm:$0xff] %vm77_vm1, %v2644_v45 }
0x1414   :  { %3326 = shalt.err (!%p3323_p0)
}
0x1415   :  { %2658 = dma.vmem_to_hbm [thread:$0]  %s2653_s29, 256, %s3974_s6, [#allocation4], %s3342_s24, %s3342_s24, %s3343_s25  }
0x1416   :  { %3339 = dma.done.wait [#allocation4], 256  }
0x1417   :  { %3340 = vsyncadd [#allocation4], 4294967040 }
0x1418   :  { %2662 = vsyncpa [#allocation3], 1 }
0x1419   :  { %2663 = vsyncpa [#allocation6], 1 }
0x141a   :  { %2664 = vsyncpa [#allocation4], 1 }

</bundles_post_ra>
